<compile_context>
chip_gen: v6e
topology: v6e:2x2x1
jax: 0.10.0
libtpu: 0.0.40
codegen_flags: <defaults>
</compile_context>

<pallas_src>
import jax
import jax.numpy as jnp
from jax import lax
from jax.experimental import pallas as pl
from jax.experimental.pallas import tpu as pltpu

# ----------------------- model config -----------------------
N_BATCH = 2
IMG = 16                          # input H = W
KH = KW = 3                       # kernel_size
C_IN, C1, C2 = 3, 4, 8            # conv channels (3 inserted at front)
HID, OUT = 32, 10                 # linear hidden width, output_size
PIMG = IMG // 2                   # 8, spatial size after MaxPool2d(2,2)
NPIX = N_BATCH * IMG * IMG        # 512 conv1 output lanes (batch folded in)
FLAT = C2 * PIMG * PIMG           # 512 features into the MLP
PP = PIMG + 2                     # 10, spatially padded pooled width
PSAMP = PP * PP                   # 100 padded pooled pixels per sample
PFLAT = N_BATCH * PSAMP           # 200 padded pooled lanes (conv2 pixel axis)
POOL_PAD = 16                     # left flat pad of the pooled scratch
POOL_W = 256                      # pooled / stacked scratch lane width
K1 = KH * KW * C_IN               # 27  conv1 contraction (9 taps x 3 ch)
K2 = KH * KW * C1                 # 36  conv2 contraction (9 taps x 4 ch)
KFC1 = C2 * PSAMP                 # 800 fc1 contraction (halo rows zero-weighted)


# ----------------------- fused Pallas kernel -----------------------

def _cnn_fused_kernel(x1s_ref, w1s_ref, b1_ref, w2s_ref, b2_ref,
                      w1p_ref, b3_ref, w2fc_ref, b4_ref, o_ref,
                      pool_scr, stk_scr, fcin_scr):
    f32 = jnp.float32

    # ---- conv1 (3->4, 3x3, 'same'): ONE matmul against wrapper-stacked taps --
    # y1 lane order: n*256 + (h%2)*128 + (w%2)*64 + (h//2)*8 + (w//2)
    y1 = jnp.dot(w1s_ref[...], x1s_ref[...],
                 preferred_element_type=f32) + b1_ref[...]          # (4, 512)

    # ---- MaxPool2d(2,2): the 4 members of every 2x2 window are 4 aligned ----
    # 64-lane slabs of the same sample block -> 3 vector maxes per sample.
    pool_scr[...] = jnp.zeros((C1, POOL_W), f32)   # zero halos + flat pad once
    for n in range(N_BATCH):
        base = n * (4 * PIMG * PIMG)                               # n * 256
        pn = jnp.maximum(
            jnp.maximum(y1[:, base:base + 64],  y1[:, base + 64:base + 128]),
            jnp.maximum(y1[:, base + 128:base + 192],
                        y1[:, base + 192:base + 256]))             # (4, 64)
        # scatter the 8 pooled rows into the spatially padded (C1, N,10,10) grid
        for r in range(PIMG):
            dst = POOL_PAD + n * PSAMP + (r + 1) * PP + 1
            pool_scr[:, dst:dst + PIMG] = pn[:, r * PIMG:(r + 1) * PIMG]

    # ---- conv2 (4->8, 3x3, 'same'): stack 9 shifted taps on sublanes, ONE ----
    # matmul.  Taps are plain static slices of the zero-padded pooled scratch.
    for k in range(KH * KW):
        kh, kw = k // KW, k % KW
        src = POOL_PAD + (kh - 1) * PP + (kw - 1)
        stk_scr[C1 * k:C1 * (k + 1), 0:PFLAT] = pool_scr[:, src:src + PFLAT]
    y2 = jnp.dot(w2s_ref[...], stk_scr[:, 0:PFLAT],
                 preferred_element_type=f32) + b2_ref[...]          # (8, 200)

    # ---- flatten (torch NCHW): channels from sublanes -> per-sample lane ----
    # blocks.  Halo lanes ride along and are killed by the zero rows of w1p.
    for n in range(N_BATCH):
        for c in range(C2):
            fcin_scr[n:n + 1, c * PSAMP:(c + 1) * PSAMP] = \
                y2[c:c + 1, n * PSAMP:(n + 1) * PSAMP]

    # ---- fc1 (512->32 via zero-padded 800 rows) + ReLU + fc2 (32->10) ----
    h = jnp.maximum(
        jnp.dot(fcin_scr[...], w1p_ref[...],
                preferred_element_type=f32) + b3_ref[...], 0.0)     # (2, 32)
    o_ref[...] = (jnp.dot(h, w2fc_ref[...],
                          preferred_element_type=f32) + b4_ref[...])


# ----------------------- wrapper (single gridless pallas_call) -----------------------

def cnn_forward(params, x_nchw):
    assert x_nchw.shape == (N_BATCH, C_IN, IMG, IMG)
    f32 = jnp.float32

    # Input prep: one small XLA fusion that builds the conv1 9-tap stacked rhs
    # with the pooling-friendly lane permutation (replaces all in-kernel tap
    # masking / shifting / pool gathering).
    xpad = jnp.pad(x_nchw, ((0, 0), (0, 0), (1, 1), (1, 1)))        # (N,3,18,18)
    xpad = jnp.transpose(xpad, (1, 0, 2, 3))                        # (3,N,18,18)
    taps = []
    for kh in range(KH):
        for kw in range(KW):
            t = xpad[:, :, kh:kh + IMG, kw:kw + IMG]                # (3,N,16,16)
            t = t.reshape(C_IN, N_BATCH, PIMG, 2, PIMG, 2)          # [ci,n,r,hp,s,wp]
            t = jnp.transpose(t, (0, 1, 3, 5, 2, 4))                # [ci,n,hp,wp,r,s]
            taps.append(t.reshape(C_IN, NPIX))
    x1s = jnp.concatenate(taps, axis=0)                             # (27, 512)

    # Weight re-layouts (tiny; fused by XLA).
    w1s = jnp.transpose(params["conv1_w"], (3, 0, 1, 2)).reshape(C1, K1)   # (4,27)
    w2s = jnp.transpose(params["conv2_w"], (3, 0, 1, 2)).reshape(C2, K2)   # (8,36)
    w1p = jnp.pad(params["fc1_w"].reshape(C2, PIMG, PIMG, HID),
                  ((0, 0), (1, 1), (1, 1), (0, 0))).reshape(KFC1, HID)     # (800,32)

    vmem = lambda: pl.BlockSpec(memory_space=pltpu.MemorySpace.VMEM)
    return pl.pallas_call(
        _cnn_fused_kernel,
        out_shape=jax.ShapeDtypeStruct((N_BATCH, OUT), f32),
        in_specs=[vmem() for _ in range(9)],
        out_specs=vmem(),
        scratch_shapes=[
            pltpu.VMEM((C1, POOL_W), f32),       # pooled, spatially padded
            pltpu.VMEM((K2, POOL_W), f32),       # conv2 stacked 9-tap rhs
            pltpu.VMEM((N_BATCH, KFC1), f32),    # fc1 lhs (N, C2*10*10)
        ],
    )(x1s, w1s, params["conv1_b"].reshape(C1, 1),
      w2s, params["conv2_b"].reshape(C2, 1),
      w1p, params["fc1_b"].reshape(1, HID),
      params["fc2_w"], params["fc2_b"].reshape(1, OUT))


# ----------------------- pure-JAX reference (validation) -----------------------

def cnn_forward_ref(params, x_nchw):
    x = jnp.transpose(x_nchw, (0, 2, 3, 1))
    dn1 = lax.conv_dimension_numbers(x.shape, params["conv1_w"].shape,
                                     ("NHWC", "HWIO", "NHWC"))
    x = lax.conv_general_dilated(x, params["conv1_w"], (1, 1), "SAME",
                                 dimension_numbers=dn1,
                                 precision=lax.Precision.HIGHEST) + params["conv1_b"]
    x = lax.reduce_window(x, -jnp.inf, lax.max, (1, 2, 2, 1), (1, 2, 2, 1), "VALID")
    dn2 = lax.conv_dimension_numbers(x.shape, params["conv2_w"].shape,
                                     ("NHWC", "HWIO", "NHWC"))
    x = lax.conv_general_dilated(x, params["conv2_w"], (1, 1), "SAME",
                                 dimension_numbers=dn2,
                                 precision=lax.Precision.HIGHEST) + params["conv2_b"]
    x = jnp.transpose(x, (0, 3, 1, 2)).reshape(x.shape[0], -1)      # NCHW flatten
    h = jnp.maximum(jnp.dot(x, params["fc1_w"],
                            precision=lax.Precision.HIGHEST) + params["fc1_b"], 0.0)
    return jnp.dot(h, params["fc2_w"],
                   precision=lax.Precision.HIGHEST) + params["fc2_b"]


# ----------------------- deterministic params -----------------------

def init_params(key):
    ks = jax.random.split(key, 8)
    s = 0.05
    return {
        "conv1_w": s * jax.random.normal(ks[0], (KH, KW, C_IN, C1), jnp.float32),
        "conv1_b": s * jax.random.normal(ks[1], (C1,), jnp.float32),
        "conv2_w": s * jax.random.normal(ks[2], (KH, KW, C1, C2), jnp.float32),
        "conv2_b": s * jax.random.normal(ks[3], (C2,), jnp.float32),
        "fc1_w":   s * jax.random.normal(ks[4], (FLAT, HID), jnp.float32),
        "fc1_b":   s * jax.random.normal(ks[5], (HID,), jnp.float32),
        "fc2_w":   s * jax.random.normal(ks[6], (HID, OUT), jnp.float32),
        "fc2_b":   s * jax.random.normal(ks[7], (OUT,), jnp.float32),
    }


if __name__ == "__main__":
    root = jax.random.PRNGKey(0)
    k_param, k_x = jax.random.split(root)
    params = init_params(k_param)
    x = jax.random.normal(k_x, (N_BATCH, C_IN, IMG, IMG), jnp.float32)

    out = jax.block_until_ready(jax.jit(cnn_forward)(params, x))
    ref = jax.block_until_ready(cnn_forward_ref(params, x))

    assert out.shape == (N_BATCH, OUT), out.shape
    assert jnp.allclose(out, ref, atol=2e-3, rtol=2e-3), \
        f"max abs err {jnp.max(jnp.abs(out - ref))}"

    print("KERNEL_OK")
</pallas_src>

<mosaic_0001>
module attributes {stable_mosaic.version = 11 : i64} {
  func.func @_cnn_fused_kernel(%arg0: memref<27x512xf32, #tpu.memory_space<vmem>>, %arg1: memref<4x27xf32, #tpu.memory_space<vmem>>, %arg2: memref<4x1xf32, #tpu.memory_space<vmem>>, %arg3: memref<8x36xf32, #tpu.memory_space<vmem>>, %arg4: memref<8x1xf32, #tpu.memory_space<vmem>>, %arg5: memref<800x32xf32, #tpu.memory_space<vmem>>, %arg6: memref<1x32xf32, #tpu.memory_space<vmem>>, %arg7: memref<32x10xf32, #tpu.memory_space<vmem>>, %arg8: memref<1x10xf32, #tpu.memory_space<vmem>>, %arg9: memref<2x10xf32, #tpu.memory_space<vmem>>, %arg10: memref<4x256xf32, #tpu.memory_space<vmem>>, %arg11: memref<36x256xf32, #tpu.memory_space<vmem>>, %arg12: memref<2x800xf32, #tpu.memory_space<vmem>>) attributes {dimension_semantics = [], scalar_prefetch = 0 : i64, scratch_operands = 3 : i64, tpu.core_type = #tpu.core_type<tc>} {
    %c0 = arith.constant 0 : index
    %c0_0 = arith.constant 0 : index
    %0 = vector.load %arg1[%c0, %c0_0] : memref<4x27xf32, #tpu.memory_space<vmem>>, vector<4x27xf32>
    %c0_1 = arith.constant 0 : index
    %c0_2 = arith.constant 0 : index
    %1 = vector.load %arg0[%c0_1, %c0_2] : memref<27x512xf32, #tpu.memory_space<vmem>>, vector<27x512xf32>
    %cst = arith.constant dense<0.000000e+00> : vector<4x512xf32>
    %2 = tpu.matmul %0, %1, %cst {dimension_numbers = #tpu.dot_dimension_numbers<[1], [0], [0], [1], [0, 0, 1, 1], [], []>} : vector<4x27xf32>, vector<27x512xf32>, vector<4x512xf32> -> vector<4x512xf32>
    %c0_3 = arith.constant 0 : index
    %c0_4 = arith.constant 0 : index
    %3 = vector.load %arg2[%c0_3, %c0_4] : memref<4x1xf32, #tpu.memory_space<vmem>>, vector<4x1xf32>
    %4 = vector.broadcast %3 : vector<4x1xf32> to vector<4x512xf32>
    %5 = arith.addf %2, %4 : vector<4x512xf32>
    %cst_5 = arith.constant 0.000000e+00 : f32
    %6 = vector.broadcast %cst_5 : f32 to vector<4x256xf32>
    %c0_6 = arith.constant 0 : index
    %c0_7 = arith.constant 0 : index
    %7 = vector.load %arg10[%c0_6, %c0_7] : memref<4x256xf32, #tpu.memory_space<vmem>>, vector<4x256xf32>
    tpu.vector_store %arg10[%c0_6, %c0_7], %6 {strides = array<i32>} : memref<4x256xf32, #tpu.memory_space<vmem>>, vector<4x256xf32>,
    %8 = vector.extract_strided_slice %5 {offsets = [0, 0], sizes = [4, 64], strides = [1, 1]} : vector<4x512xf32> to vector<4x64xf32>
    %9 = vector.extract_strided_slice %5 {offsets = [0, 64], sizes = [4, 64], strides = [1, 1]} : vector<4x512xf32> to vector<4x64xf32>
    %10 = arith.maximumf %8, %9 : vector<4x64xf32>
    %11 = vector.extract_strided_slice %5 {offsets = [0, 128], sizes = [4, 64], strides = [1, 1]} : vector<4x512xf32> to vector<4x64xf32>
    %12 = vector.extract_strided_slice %5 {offsets = [0, 192], sizes = [4, 64], strides = [1, 1]} : vector<4x512xf32> to vector<4x64xf32>
    %13 = arith.maximumf %11, %12 : vector<4x64xf32>
    %14 = arith.maximumf %10, %13 : vector<4x64xf32>
    %15 = vector.extract_strided_slice %14 {offsets = [0, 0], sizes = [4, 8], strides = [1, 1]} : vector<4x64xf32> to vector<4x8xf32>
    %c0_8 = arith.constant 0 : index
    %c27 = arith.constant 27 : index
    %16 = vector.load %arg10[%c0_8, %c27] : memref<4x256xf32, #tpu.memory_space<vmem>>, vector<4x8xf32>
    tpu.vector_store %arg10[%c0_8, %c27], %15 {strides = array<i32>} : memref<4x256xf32, #tpu.memory_space<vmem>>, vector<4x8xf32>,
    %17 = vector.extract_strided_slice %14 {offsets = [0, 8], sizes = [4, 8], strides = [1, 1]} : vector<4x64xf32> to vector<4x8xf32>
    %c0_9 = arith.constant 0 : index
    %c37 = arith.constant 37 : index
    %18 = vector.load %arg10[%c0_9, %c37] : memref<4x256xf32, #tpu.memory_space<vmem>>, vector<4x8xf32>
    tpu.vector_store %arg10[%c0_9, %c37], %17 {strides = array<i32>} : memref<4x256xf32, #tpu.memory_space<vmem>>, vector<4x8xf32>,
    %19 = vector.extract_strided_slice %14 {offsets = [0, 16], sizes = [4, 8], strides = [1, 1]} : vector<4x64xf32> to vector<4x8xf32>
    %c0_10 = arith.constant 0 : index
    %c47 = arith.constant 47 : index
    %20 = vector.load %arg10[%c0_10, %c47] : memref<4x256xf32, #tpu.memory_space<vmem>>, vector<4x8xf32>
    tpu.vector_store %arg10[%c0_10, %c47], %19 {strides = array<i32>} : memref<4x256xf32, #tpu.memory_space<vmem>>, vector<4x8xf32>,
    %21 = vector.extract_strided_slice %14 {offsets = [0, 24], sizes = [4, 8], strides = [1, 1]} : vector<4x64xf32> to vector<4x8xf32>
    %c0_11 = arith.constant 0 : index
    %c57 = arith.constant 57 : index
    %22 = vector.load %arg10[%c0_11, %c57] : memref<4x256xf32, #tpu.memory_space<vmem>>, vector<4x8xf32>
    tpu.vector_store %arg10[%c0_11, %c57], %21 {strides = array<i32>} : memref<4x256xf32, #tpu.memory_space<vmem>>, vector<4x8xf32>,
    %23 = vector.extract_strided_slice %14 {offsets = [0, 32], sizes = [4, 8], strides = [1, 1]} : vector<4x64xf32> to vector<4x8xf32>
    %c0_12 = arith.constant 0 : index
    %c67 = arith.constant 67 : index
    %24 = vector.load %arg10[%c0_12, %c67] : memref<4x256xf32, #tpu.memory_space<vmem>>, vector<4x8xf32>
    tpu.vector_store %arg10[%c0_12, %c67], %23 {strides = array<i32>} : memref<4x256xf32, #tpu.memory_space<vmem>>, vector<4x8xf32>,
    %25 = vector.extract_strided_slice %14 {offsets = [0, 40], sizes = [4, 8], strides = [1, 1]} : vector<4x64xf32> to vector<4x8xf32>
    %c0_13 = arith.constant 0 : index
    %c77 = arith.constant 77 : index
    %26 = vector.load %arg10[%c0_13, %c77] : memref<4x256xf32, #tpu.memory_space<vmem>>, vector<4x8xf32>
    tpu.vector_store %arg10[%c0_13, %c77], %25 {strides = array<i32>} : memref<4x256xf32, #tpu.memory_space<vmem>>, vector<4x8xf32>,
    %27 = vector.extract_strided_slice %14 {offsets = [0, 48], sizes = [4, 8], strides = [1, 1]} : vector<4x64xf32> to vector<4x8xf32>
    %c0_14 = arith.constant 0 : index
    %c87 = arith.constant 87 : index
    %28 = vector.load %arg10[%c0_14, %c87] : memref<4x256xf32, #tpu.memory_space<vmem>>, vector<4x8xf32>
    tpu.vector_store %arg10[%c0_14, %c87], %27 {strides = array<i32>} : memref<4x256xf32, #tpu.memory_space<vmem>>, vector<4x8xf32>,
    %29 = vector.extract_strided_slice %14 {offsets = [0, 56], sizes = [4, 8], strides = [1, 1]} : vector<4x64xf32> to vector<4x8xf32>
    %c0_15 = arith.constant 0 : index
    %c97 = arith.constant 97 : index
    %30 = vector.load %arg10[%c0_15, %c97] : memref<4x256xf32, #tpu.memory_space<vmem>>, vector<4x8xf32>
    tpu.vector_store %arg10[%c0_15, %c97], %29 {strides = array<i32>} : memref<4x256xf32, #tpu.memory_space<vmem>>, vector<4x8xf32>,
    %31 = vector.extract_strided_slice %5 {offsets = [0, 256], sizes = [4, 64], strides = [1, 1]} : vector<4x512xf32> to vector<4x64xf32>
    %32 = vector.extract_strided_slice %5 {offsets = [0, 320], sizes = [4, 64], strides = [1, 1]} : vector<4x512xf32> to vector<4x64xf32>
    %33 = arith.maximumf %31, %32 : vector<4x64xf32>
    %34 = vector.extract_strided_slice %5 {offsets = [0, 384], sizes = [4, 64], strides = [1, 1]} : vector<4x512xf32> to vector<4x64xf32>
    %35 = vector.extract_strided_slice %5 {offsets = [0, 448], sizes = [4, 64], strides = [1, 1]} : vector<4x512xf32> to vector<4x64xf32>
    %36 = arith.maximumf %34, %35 : vector<4x64xf32>
    %37 = arith.maximumf %33, %36 : vector<4x64xf32>
    %38 = vector.extract_strided_slice %37 {offsets = [0, 0], sizes = [4, 8], strides = [1, 1]} : vector<4x64xf32> to vector<4x8xf32>
    %c0_16 = arith.constant 0 : index
    %c127 = arith.constant 127 : index
    %39 = vector.load %arg10[%c0_16, %c127] : memref<4x256xf32, #tpu.memory_space<vmem>>, vector<4x8xf32>
    tpu.vector_store %arg10[%c0_16, %c127], %38 {strides = array<i32>} : memref<4x256xf32, #tpu.memory_space<vmem>>, vector<4x8xf32>,
    %40 = vector.extract_strided_slice %37 {offsets = [0, 8], sizes = [4, 8], strides = [1, 1]} : vector<4x64xf32> to vector<4x8xf32>
    %c0_17 = arith.constant 0 : index
    %c137 = arith.constant 137 : index
    %41 = vector.load %arg10[%c0_17, %c137] : memref<4x256xf32, #tpu.memory_space<vmem>>, vector<4x8xf32>
    tpu.vector_store %arg10[%c0_17, %c137], %40 {strides = array<i32>} : memref<4x256xf32, #tpu.memory_space<vmem>>, vector<4x8xf32>,
    %42 = vector.extract_strided_slice %37 {offsets = [0, 16], sizes = [4, 8], strides = [1, 1]} : vector<4x64xf32> to vector<4x8xf32>
    %c0_18 = arith.constant 0 : index
    %c147 = arith.constant 147 : index
    %43 = vector.load %arg10[%c0_18, %c147] : memref<4x256xf32, #tpu.memory_space<vmem>>, vector<4x8xf32>
    tpu.vector_store %arg10[%c0_18, %c147], %42 {strides = array<i32>} : memref<4x256xf32, #tpu.memory_space<vmem>>, vector<4x8xf32>,
    %44 = vector.extract_strided_slice %37 {offsets = [0, 24], sizes = [4, 8], strides = [1, 1]} : vector<4x64xf32> to vector<4x8xf32>
    %c0_19 = arith.constant 0 : index
    %c157 = arith.constant 157 : index
    %45 = vector.load %arg10[%c0_19, %c157] : memref<4x256xf32, #tpu.memory_space<vmem>>, vector<4x8xf32>
    tpu.vector_store %arg10[%c0_19, %c157], %44 {strides = array<i32>} : memref<4x256xf32, #tpu.memory_space<vmem>>, vector<4x8xf32>,
    %46 = vector.extract_strided_slice %37 {offsets = [0, 32], sizes = [4, 8], strides = [1, 1]} : vector<4x64xf32> to vector<4x8xf32>
    %c0_20 = arith.constant 0 : index
    %c167 = arith.constant 167 : index
    %47 = vector.load %arg10[%c0_20, %c167] : memref<4x256xf32, #tpu.memory_space<vmem>>, vector<4x8xf32>
    tpu.vector_store %arg10[%c0_20, %c167], %46 {strides = array<i32>} : memref<4x256xf32, #tpu.memory_space<vmem>>, vector<4x8xf32>,
    %48 = vector.extract_strided_slice %37 {offsets = [0, 40], sizes = [4, 8], strides = [1, 1]} : vector<4x64xf32> to vector<4x8xf32>
    %c0_21 = arith.constant 0 : index
    %c177 = arith.constant 177 : index
    %49 = vector.load %arg10[%c0_21, %c177] : memref<4x256xf32, #tpu.memory_space<vmem>>, vector<4x8xf32>
    tpu.vector_store %arg10[%c0_21, %c177], %48 {strides = array<i32>} : memref<4x256xf32, #tpu.memory_space<vmem>>, vector<4x8xf32>,
    %50 = vector.extract_strided_slice %37 {offsets = [0, 48], sizes = [4, 8], strides = [1, 1]} : vector<4x64xf32> to vector<4x8xf32>
    %c0_22 = arith.constant 0 : index
    %c187 = arith.constant 187 : index
    %51 = vector.load %arg10[%c0_22, %c187] : memref<4x256xf32, #tpu.memory_space<vmem>>, vector<4x8xf32>
    tpu.vector_store %arg10[%c0_22, %c187], %50 {strides = array<i32>} : memref<4x256xf32, #tpu.memory_space<vmem>>, vector<4x8xf32>,
    %52 = vector.extract_strided_slice %37 {offsets = [0, 56], sizes = [4, 8], strides = [1, 1]} : vector<4x64xf32> to vector<4x8xf32>
    %c0_23 = arith.constant 0 : index
    %c197 = arith.constant 197 : index
    %53 = vector.load %arg10[%c0_23, %c197] : memref<4x256xf32, #tpu.memory_space<vmem>>, vector<4x8xf32>
    tpu.vector_store %arg10[%c0_23, %c197], %52 {strides = array<i32>} : memref<4x256xf32, #tpu.memory_space<vmem>>, vector<4x8xf32>,
    %c0_24 = arith.constant 0 : index
    %c5 = arith.constant 5 : index
    %54 = vector.load %arg10[%c0_24, %c5] : memref<4x256xf32, #tpu.memory_space<vmem>>, vector<4x200xf32>
    %c0_25 = arith.constant 0 : index
    %c0_26 = arith.constant 0 : index
    %55 = vector.load %arg11[%c0_25, %c0_26] : memref<36x256xf32, #tpu.memory_space<vmem>>, vector<4x200xf32>
    tpu.vector_store %arg11[%c0_25, %c0_26], %54 {strides = array<i32>} : memref<36x256xf32, #tpu.memory_space<vmem>>, vector<4x200xf32>,
    %c0_27 = arith.constant 0 : index
    %c6 = arith.constant 6 : index
    %56 = vector.load %arg10[%c0_27, %c6] : memref<4x256xf32, #tpu.memory_space<vmem>>, vector<4x200xf32>
    %c4 = arith.constant 4 : index
    %c0_28 = arith.constant 0 : index
    %57 = vector.load %arg11[%c4, %c0_28] : memref<36x256xf32, #tpu.memory_space<vmem>>, vector<4x200xf32>
    tpu.vector_store %arg11[%c4, %c0_28], %56 {strides = array<i32>} : memref<36x256xf32, #tpu.memory_space<vmem>>, vector<4x200xf32>,
    %c0_29 = arith.constant 0 : index
    %c7 = arith.constant 7 : index
    %58 = vector.load %arg10[%c0_29, %c7] : memref<4x256xf32, #tpu.memory_space<vmem>>, vector<4x200xf32>
    %c8 = arith.constant 8 : index
    %c0_30 = arith.constant 0 : index
    %59 = vector.load %arg11[%c8, %c0_30] : memref<36x256xf32, #tpu.memory_space<vmem>>, vector<4x200xf32>
    tpu.vector_store %arg11[%c8, %c0_30], %58 {strides = array<i32>} : memref<36x256xf32, #tpu.memory_space<vmem>>, vector<4x200xf32>,
    %c0_31 = arith.constant 0 : index
    %c15 = arith.constant 15 : index
    %60 = vector.load %arg10[%c0_31, %c15] : memref<4x256xf32, #tpu.memory_space<vmem>>, vector<4x200xf32>
    %c12 = arith.constant 12 : index
    %c0_32 = arith.constant 0 : index
    %61 = vector.load %arg11[%c12, %c0_32] : memref<36x256xf32, #tpu.memory_space<vmem>>, vector<4x200xf32>
    tpu.vector_store %arg11[%c12, %c0_32], %60 {strides = array<i32>} : memref<36x256xf32, #tpu.memory_space<vmem>>, vector<4x200xf32>,
    %c0_33 = arith.constant 0 : index
    %c16 = arith.constant 16 : index
    %62 = vector.load %arg10[%c0_33, %c16] : memref<4x256xf32, #tpu.memory_space<vmem>>, vector<4x200xf32>
    %c16_34 = arith.constant 16 : index
    %c0_35 = arith.constant 0 : index
    %63 = vector.load %arg11[%c16_34, %c0_35] : memref<36x256xf32, #tpu.memory_space<vmem>>, vector<4x200xf32>
    tpu.vector_store %arg11[%c16_34, %c0_35], %62 {strides = array<i32>} : memref<36x256xf32, #tpu.memory_space<vmem>>, vector<4x200xf32>,
    %c0_36 = arith.constant 0 : index
    %c17 = arith.constant 17 : index
    %64 = vector.load %arg10[%c0_36, %c17] : memref<4x256xf32, #tpu.memory_space<vmem>>, vector<4x200xf32>
    %c20 = arith.constant 20 : index
    %c0_37 = arith.constant 0 : index
    %65 = vector.load %arg11[%c20, %c0_37] : memref<36x256xf32, #tpu.memory_space<vmem>>, vector<4x200xf32>
    tpu.vector_store %arg11[%c20, %c0_37], %64 {strides = array<i32>} : memref<36x256xf32, #tpu.memory_space<vmem>>, vector<4x200xf32>,
    %c0_38 = arith.constant 0 : index
    %c25 = arith.constant 25 : index
    %66 = vector.load %arg10[%c0_38, %c25] : memref<4x256xf32, #tpu.memory_space<vmem>>, vector<4x200xf32>
    %c24 = arith.constant 24 : index
    %c0_39 = arith.constant 0 : index
    %67 = vector.load %arg11[%c24, %c0_39] : memref<36x256xf32, #tpu.memory_space<vmem>>, vector<4x200xf32>
    tpu.vector_store %arg11[%c24, %c0_39], %66 {strides = array<i32>} : memref<36x256xf32, #tpu.memory_space<vmem>>, vector<4x200xf32>,
    %c0_40 = arith.constant 0 : index
    %c26 = arith.constant 26 : index
    %68 = vector.load %arg10[%c0_40, %c26] : memref<4x256xf32, #tpu.memory_space<vmem>>, vector<4x200xf32>
    %c28 = arith.constant 28 : index
    %c0_41 = arith.constant 0 : index
    %69 = vector.load %arg11[%c28, %c0_41] : memref<36x256xf32, #tpu.memory_space<vmem>>, vector<4x200xf32>
    tpu.vector_store %arg11[%c28, %c0_41], %68 {strides = array<i32>} : memref<36x256xf32, #tpu.memory_space<vmem>>, vector<4x200xf32>,
    %c0_42 = arith.constant 0 : index
    %c27_43 = arith.constant 27 : index
    %70 = vector.load %arg10[%c0_42, %c27_43] : memref<4x256xf32, #tpu.memory_space<vmem>>, vector<4x200xf32>
    %c32 = arith.constant 32 : index
    %c0_44 = arith.constant 0 : index
    %71 = vector.load %arg11[%c32, %c0_44] : memref<36x256xf32, #tpu.memory_space<vmem>>, vector<4x200xf32>
    tpu.vector_store %arg11[%c32, %c0_44], %70 {strides = array<i32>} : memref<36x256xf32, #tpu.memory_space<vmem>>, vector<4x200xf32>,
    %c0_45 = arith.constant 0 : index
    %c0_46 = arith.constant 0 : index
    %72 = vector.load %arg3[%c0_45, %c0_46] : memref<8x36xf32, #tpu.memory_space<vmem>>, vector<8x36xf32>
    %c0_47 = arith.constant 0 : index
    %c0_48 = arith.constant 0 : index
    %73 = vector.load %arg11[%c0_47, %c0_48] : memref<36x256xf32, #tpu.memory_space<vmem>>, vector<36x200xf32>
    %cst_49 = arith.constant dense<0.000000e+00> : vector<8x200xf32>
    %74 = tpu.matmul %72, %73, %cst_49 {dimension_numbers = #tpu.dot_dimension_numbers<[1], [0], [0], [1], [0, 0, 1, 1], [], []>} : vector<8x36xf32>, vector<36x200xf32>, vector<8x200xf32> -> vector<8x200xf32>
    %c0_50 = arith.constant 0 : index
    %c0_51 = arith.constant 0 : index
    %75 = vector.load %arg4[%c0_50, %c0_51] : memref<8x1xf32, #tpu.memory_space<vmem>>, vector<8x1xf32>
    %76 = vector.broadcast %75 : vector<8x1xf32> to vector<8x200xf32>
    %77 = arith.addf %74, %76 : vector<8x200xf32>
    %78 = vector.extract_strided_slice %77 {offsets = [0, 0], sizes = [1, 100], strides = [1, 1]} : vector<8x200xf32> to vector<1x100xf32>
    %c0_52 = arith.constant 0 : index
    %c0_53 = arith.constant 0 : index
    %79 = vector.load %arg12[%c0_52, %c0_53] : memref<2x800xf32, #tpu.memory_space<vmem>>, vector<1x100xf32>
    tpu.vector_store %arg12[%c0_52, %c0_53], %78 {strides = array<i32>} : memref<2x800xf32, #tpu.memory_space<vmem>>, vector<1x100xf32>,
    %80 = vector.extract_strided_slice %77 {offsets = [1, 0], sizes = [1, 100], strides = [1, 1]} : vector<8x200xf32> to vector<1x100xf32>
    %c0_54 = arith.constant 0 : index
    %c100 = arith.constant 100 : index
    %81 = vector.load %arg12[%c0_54, %c100] : memref<2x800xf32, #tpu.memory_space<vmem>>, vector<1x100xf32>
    tpu.vector_store %arg12[%c0_54, %c100], %80 {strides = array<i32>} : memref<2x800xf32, #tpu.memory_space<vmem>>, vector<1x100xf32>,
    %82 = vector.extract_strided_slice %77 {offsets = [2, 0], sizes = [1, 100], strides = [1, 1]} : vector<8x200xf32> to vector<1x100xf32>
    %c0_55 = arith.constant 0 : index
    %c200 = arith.constant 200 : index
    %83 = vector.load %arg12[%c0_55, %c200] : memref<2x800xf32, #tpu.memory_space<vmem>>, vector<1x100xf32>
    tpu.vector_store %arg12[%c0_55, %c200], %82 {strides = array<i32>} : memref<2x800xf32, #tpu.memory_space<vmem>>, vector<1x100xf32>,
    %84 = vector.extract_strided_slice %77 {offsets = [3, 0], sizes = [1, 100], strides = [1, 1]} : vector<8x200xf32> to vector<1x100xf32>
    %c0_56 = arith.constant 0 : index
    %c300 = arith.constant 300 : index
    %85 = vector.load %arg12[%c0_56, %c300] : memref<2x800xf32, #tpu.memory_space<vmem>>, vector<1x100xf32>
    tpu.vector_store %arg12[%c0_56, %c300], %84 {strides = array<i32>} : memref<2x800xf32, #tpu.memory_space<vmem>>, vector<1x100xf32>,
    %86 = vector.extract_strided_slice %77 {offsets = [4, 0], sizes = [1, 100], strides = [1, 1]} : vector<8x200xf32> to vector<1x100xf32>
    %c0_57 = arith.constant 0 : index
    %c400 = arith.constant 400 : index
    %87 = vector.load %arg12[%c0_57, %c400] : memref<2x800xf32, #tpu.memory_space<vmem>>, vector<1x100xf32>
    tpu.vector_store %arg12[%c0_57, %c400], %86 {strides = array<i32>} : memref<2x800xf32, #tpu.memory_space<vmem>>, vector<1x100xf32>,
    %88 = vector.extract_strided_slice %77 {offsets = [5, 0], sizes = [1, 100], strides = [1, 1]} : vector<8x200xf32> to vector<1x100xf32>
    %c0_58 = arith.constant 0 : index
    %c500 = arith.constant 500 : index
    %89 = vector.load %arg12[%c0_58, %c500] : memref<2x800xf32, #tpu.memory_space<vmem>>, vector<1x100xf32>
    tpu.vector_store %arg12[%c0_58, %c500], %88 {strides = array<i32>} : memref<2x800xf32, #tpu.memory_space<vmem>>, vector<1x100xf32>,
    %90 = vector.extract_strided_slice %77 {offsets = [6, 0], sizes = [1, 100], strides = [1, 1]} : vector<8x200xf32> to vector<1x100xf32>
    %c0_59 = arith.constant 0 : index
    %c600 = arith.constant 600 : index
    %91 = vector.load %arg12[%c0_59, %c600] : memref<2x800xf32, #tpu.memory_space<vmem>>, vector<1x100xf32>
    tpu.vector_store %arg12[%c0_59, %c600], %90 {strides = array<i32>} : memref<2x800xf32, #tpu.memory_space<vmem>>, vector<1x100xf32>,
    %92 = vector.extract_strided_slice %77 {offsets = [7, 0], sizes = [1, 100], strides = [1, 1]} : vector<8x200xf32> to vector<1x100xf32>
    %c0_60 = arith.constant 0 : index
    %c700 = arith.constant 700 : index
    %93 = vector.load %arg12[%c0_60, %c700] : memref<2x800xf32, #tpu.memory_space<vmem>>, vector<1x100xf32>
    tpu.vector_store %arg12[%c0_60, %c700], %92 {strides = array<i32>} : memref<2x800xf32, #tpu.memory_space<vmem>>, vector<1x100xf32>,
    %94 = vector.extract_strided_slice %77 {offsets = [0, 100], sizes = [1, 100], strides = [1, 1]} : vector<8x200xf32> to vector<1x100xf32>
    %c1 = arith.constant 1 : index
    %c0_61 = arith.constant 0 : index
    %95 = vector.load %arg12[%c1, %c0_61] : memref<2x800xf32, #tpu.memory_space<vmem>>, vector<1x100xf32>
    tpu.vector_store %arg12[%c1, %c0_61], %94 {strides = array<i32>} : memref<2x800xf32, #tpu.memory_space<vmem>>, vector<1x100xf32>,
    %96 = vector.extract_strided_slice %77 {offsets = [1, 100], sizes = [1, 100], strides = [1, 1]} : vector<8x200xf32> to vector<1x100xf32>
    %c1_62 = arith.constant 1 : index
    %c100_63 = arith.constant 100 : index
    %97 = vector.load %arg12[%c1_62, %c100_63] : memref<2x800xf32, #tpu.memory_space<vmem>>, vector<1x100xf32>
    tpu.vector_store %arg12[%c1_62, %c100_63], %96 {strides = array<i32>} : memref<2x800xf32, #tpu.memory_space<vmem>>, vector<1x100xf32>,
    %98 = vector.extract_strided_slice %77 {offsets = [2, 100], sizes = [1, 100], strides = [1, 1]} : vector<8x200xf32> to vector<1x100xf32>
    %c1_64 = arith.constant 1 : index
    %c200_65 = arith.constant 200 : index
    %99 = vector.load %arg12[%c1_64, %c200_65] : memref<2x800xf32, #tpu.memory_space<vmem>>, vector<1x100xf32>
    tpu.vector_store %arg12[%c1_64, %c200_65], %98 {strides = array<i32>} : memref<2x800xf32, #tpu.memory_space<vmem>>, vector<1x100xf32>,
    %100 = vector.extract_strided_slice %77 {offsets = [3, 100], sizes = [1, 100], strides = [1, 1]} : vector<8x200xf32> to vector<1x100xf32>
    %c1_66 = arith.constant 1 : index
    %c300_67 = arith.constant 300 : index
    %101 = vector.load %arg12[%c1_66, %c300_67] : memref<2x800xf32, #tpu.memory_space<vmem>>, vector<1x100xf32>
    tpu.vector_store %arg12[%c1_66, %c300_67], %100 {strides = array<i32>} : memref<2x800xf32, #tpu.memory_space<vmem>>, vector<1x100xf32>,
    %102 = vector.extract_strided_slice %77 {offsets = [4, 100], sizes = [1, 100], strides = [1, 1]} : vector<8x200xf32> to vector<1x100xf32>
    %c1_68 = arith.constant 1 : index
    %c400_69 = arith.constant 400 : index
    %103 = vector.load %arg12[%c1_68, %c400_69] : memref<2x800xf32, #tpu.memory_space<vmem>>, vector<1x100xf32>
    tpu.vector_store %arg12[%c1_68, %c400_69], %102 {strides = array<i32>} : memref<2x800xf32, #tpu.memory_space<vmem>>, vector<1x100xf32>,
    %104 = vector.extract_strided_slice %77 {offsets = [5, 100], sizes = [1, 100], strides = [1, 1]} : vector<8x200xf32> to vector<1x100xf32>
    %c1_70 = arith.constant 1 : index
    %c500_71 = arith.constant 500 : index
    %105 = vector.load %arg12[%c1_70, %c500_71] : memref<2x800xf32, #tpu.memory_space<vmem>>, vector<1x100xf32>
    tpu.vector_store %arg12[%c1_70, %c500_71], %104 {strides = array<i32>} : memref<2x800xf32, #tpu.memory_space<vmem>>, vector<1x100xf32>,
    %106 = vector.extract_strided_slice %77 {offsets = [6, 100], sizes = [1, 100], strides = [1, 1]} : vector<8x200xf32> to vector<1x100xf32>
    %c1_72 = arith.constant 1 : index
    %c600_73 = arith.constant 600 : index
    %107 = vector.load %arg12[%c1_72, %c600_73] : memref<2x800xf32, #tpu.memory_space<vmem>>, vector<1x100xf32>
    tpu.vector_store %arg12[%c1_72, %c600_73], %106 {strides = array<i32>} : memref<2x800xf32, #tpu.memory_space<vmem>>, vector<1x100xf32>,
    %108 = vector.extract_strided_slice %77 {offsets = [7, 100], sizes = [1, 100], strides = [1, 1]} : vector<8x200xf32> to vector<1x100xf32>
    %c1_74 = arith.constant 1 : index
    %c700_75 = arith.constant 700 : index
    %109 = vector.load %arg12[%c1_74, %c700_75] : memref<2x800xf32, #tpu.memory_space<vmem>>, vector<1x100xf32>
    tpu.vector_store %arg12[%c1_74, %c700_75], %108 {strides = array<i32>} : memref<2x800xf32, #tpu.memory_space<vmem>>, vector<1x100xf32>,
    %c0_76 = arith.constant 0 : index
    %c0_77 = arith.constant 0 : index
    %110 = vector.load %arg12[%c0_76, %c0_77] : memref<2x800xf32, #tpu.memory_space<vmem>>, vector<2x800xf32>
    %c0_78 = arith.constant 0 : index
    %c0_79 = arith.constant 0 : index
    %111 = vector.load %arg5[%c0_78, %c0_79] : memref<800x32xf32, #tpu.memory_space<vmem>>, vector<800x32xf32>
    %cst_80 = arith.constant dense<0.000000e+00> : vector<2x32xf32>
    %112 = tpu.matmul %110, %111, %cst_80 {dimension_numbers = #tpu.dot_dimension_numbers<[1], [0], [0], [1], [0, 0, 1, 1], [], []>} : vector<2x800xf32>, vector<800x32xf32>, vector<2x32xf32> -> vector<2x32xf32>
    %c0_81 = arith.constant 0 : index
    %c0_82 = arith.constant 0 : index
    %113 = vector.load %arg6[%c0_81, %c0_82] : memref<1x32xf32, #tpu.memory_space<vmem>>, vector<1x32xf32>
    %114 = vector.broadcast %113 : vector<1x32xf32> to vector<2x32xf32>
    %115 = arith.addf %112, %114 : vector<2x32xf32>
    %cst_83 = arith.constant 0.000000e+00 : f32
    %116 = vector.broadcast %cst_83 : f32 to vector<2x32xf32>
    %117 = arith.maximumf %115, %116 : vector<2x32xf32>
    %c0_84 = arith.constant 0 : index
    %c0_85 = arith.constant 0 : index
    %118 = vector.load %arg7[%c0_84, %c0_85] : memref<32x10xf32, #tpu.memory_space<vmem>>, vector<32x10xf32>
    %cst_86 = arith.constant dense<0.000000e+00> : vector<2x10xf32>
    %119 = tpu.matmul %117, %118, %cst_86 {dimension_numbers = #tpu.dot_dimension_numbers<[1], [0], [0], [1], [0, 0, 1, 1], [], []>} : vector<2x32xf32>, vector<32x10xf32>, vector<2x10xf32> -> vector<2x10xf32>
    %c0_87 = arith.constant 0 : index
    %c0_88 = arith.constant 0 : index
    %120 = vector.load %arg8[%c0_87, %c0_88] : memref<1x10xf32, #tpu.memory_space<vmem>>, vector<1x10xf32>
    %121 = vector.broadcast %120 : vector<1x10xf32> to vector<2x10xf32>
    %122 = arith.addf %119, %121 : vector<2x10xf32>
    %c0_89 = arith.constant 0 : index
    %c0_90 = arith.constant 0 : index
    %123 = vector.load %arg9[%c0_89, %c0_90] : memref<2x10xf32, #tpu.memory_space<vmem>>, vector<2x10xf32>
    tpu.vector_store %arg9[%c0_89, %c0_90], %122 {strides = array<i32>} : memref<2x10xf32, #tpu.memory_space<vmem>>, vector<2x10xf32>,
    return
  }
}

</mosaic_0001>

<bundles_post_ra>
// kernel: cnn_forward.1
= control target key start
LH: loop header
LB: loop body
LE: loop exit
PB: predicated region body
PF: predicated region fallthrough
CT: control target
= control target key end

     0   :  { %vm60_vm0 = vcmask 1042432   ;;  %v1468_v9 = vmov 0.0   ;;  %s2044_s0 = inlined_call_operand.vmem [shape: f32[27,512], index: 0, kind: input, shape index: {}]   ;;  %s2045_s1 = inlined_call_operand.vmem [shape: f32[4,27], index: 1, kind: input, shape index: {}]   ;;  %s2046_s2 = inlined_call_operand.vmem [shape: f32[4,1], index: 2, kind: input, shape index: {}]   ;;  %s2047_s3 = inlined_call_operand.vmem [shape: f32[8,36], index: 3, kind: input, shape index: {}]   ;;  %s2048_s4 = inlined_call_operand.vmem [shape: f32[8,1], index: 4, kind: input, shape index: {}]   ;;  %s2049_s5 = inlined_call_operand.vmem [shape: f32[800,32], index: 5, kind: input, shape index: {}]   ;;  %s2050_s6 = inlined_call_operand.vmem [shape: f32[1,32], index: 6, kind: input, shape index: {}]   ;;  %s2051_s7 = inlined_call_operand.vmem [shape: f32[32,10], index: 7, kind: input, shape index: {}]   ;;  %s2052_s8 = inlined_call_operand.vmem [shape: f32[1,10], index: 8, kind: input, shape index: {}]   ;;  %s2053_s9 = inlined_call_operand.hbm [shape: f32[2,10], index: 9, kind: output, shape index: {}]  }
   0x1   :  { %v47_v0 = vld [vmem:[%s2044_s0 + $0x68] sm:$0x7]  ;;  %v49_v1 = vld [vmem:[%s2044_s0 + $0x78] sm:$0x7]  ;;  %v46_v3 = vld [vmem:[%s2044_s0 + $0x60] sm:$0x7] }
   0x2   :  { %v43_v2 = vld [vmem:[%s2044_s0 + $0x48] sm:$0xff]  ;;  %1243 = vmatprep.subr.msk.mxu0 %vm60_vm0, %v47_v0  ;;  %1246 = vmatprep.subr.msk.mxu1 %vm60_vm0, %v49_v1  ;;  %v48_v4 = vld [vmem:[%s2044_s0 + $0x70] sm:$0x7]  ;;  %v45_v5 = vld [vmem:[%s2044_s0 + $0x58] sm:$0xff]  ;;  %215 = vst [vmem:[#allocation2] sm:$0xff] %v1468_v9 }
   0x3   :  { %1244 = vmatpush1.msk.msra.mxu0 %vm60_vm0, %v46_v3  ;;  %1247 = vmatpush1.msk.msra.mxu1 %vm60_vm0, %v48_v4  ;;  %v42_v6 = vld [vmem:[%s2044_s0 + $0x40] sm:$0xff]  ;;  %v44_v7 = vld [vmem:[%s2044_s0 + $0x50] sm:$0xff]  ;;  %v39_v8 = vld [vmem:[%s2044_s0 + $0x28] sm:$0xff] }
   0x4   :  { %99 = vmatprep.subr.mxu0 %v43_v2  ;;  %170 = vmatprep.subr.mxu1 %v45_v5  ;;  %v41_v10 = vld [vmem:[%s2044_s0 + $0x38] sm:$0xff]  ;;  %v38_v11 = vld [vmem:[%s2044_s0 + $0x20] sm:$0xff]  ;;  %v40_v12 = vld [vmem:[%s2044_s0 + $0x30] sm:$0xff] }
   0x5   :  { %100 = vmatpush1.msra.mxu0 %v42_v6  ;;  %171 = vmatpush1.msra.mxu1 %v44_v7  ;;  %v35_v13 = vld [vmem:[%s2044_s0 + $0x8] sm:$0xff]  ;;  %v37_v14 = vld [vmem:[%s2044_s0 + $0x18] sm:$0xff]  ;;  %v34_v15 = vld [vmem:[%s2044_s0] sm:$0xff] }
   0x6   :  { %101 = vmatprep.subr.mxu0 %v39_v8  ;;  %172 = vmatprep.subr.mxu1 %v41_v10  ;;  %v36_v16 = vld [vmem:[%s2044_s0 + $0x10] sm:$0xff] }
   0x7   :  { %102 = vmatpush1.msra.mxu0 %v38_v11  ;;  %173 = vmatpush1.msra.mxu1 %v40_v12 }
   0x8   :  { %14 = vsyncpa [#allocation6], 0  ;;  %103 = vmatprep.subr.mxu0 %v35_v13  ;;  %174 = vmatprep.subr.mxu1 %v37_v14  ;;  %v33_v17 = vld [vmem:[%s2045_s1] sm:$0xf]  ;;  %vm56_vm1 = vcmask 220160   ;;  %v1469_v19 = vmov 0  }
   0x9   :  { %104 = vmatpush1.msra.mxu0 %v34_v15  ;;  %137 = vmatprep.mubr.f32.mxu0 %v1468_v9  ;;  %v50_v18 = vld [vmem:[%s2046_s2] sm:$0xf]  ;;  %s1470_s0 = smov 64   ;;  %s1471_s1 = smov 29   ;;  %vm231_vm2 = vcmask 281816   ;;  %vm236_vm3 = vcmask 363816  }
   0xa   :  { %175 = vmatpush1.msra.mxu1 %v36_v16  ;;  %208 = vmatprep.mubr.f32.mxu1 %v1468_v9  ;;  %s1472_s2 = smov 27   ;;  %s1473_s24 = smov 33   ;;  %vm241_vm4 = vcmask 445816   ;;  %vm246_vm5 = vcmask 527816   ;;  %vm251_vm6 = vcmask 609816   ;;  %vm256_vm7 = vcmask 691816  }
   0xb   :  { %1245 = vmatmul.mubr.msk.f32.vlgmr.msra.gmra.mxu0 %vm56_vm1, %v33_v17  ;;  %1248 = vmatmul.mubr.msk.f32.vlgmr.msra.gmra.mxu1 %vm56_vm1, %v33_v17  ;;  %s1474_s25 = smov 31   ;;  %s1475_s26 = smov 37   ;;  %vm261_vm8 = vcmask 773816   ;;  %vm286_vm9 = vcmask 1044472   ;;  %vm287_vm10 = vcmask 56324   ;;  %vm283_vm11 = vcmask 1039360  }
   0xc   :  { %1440 = vset.pattern.permute.xlu0 %v1469_v19  ;;  %536 = vmatprep.mubr.f32.mxu0 %v1468_v9  ;;  %s1476_s27 = smov 35   ;;  %s1477_s28 = smov 39   ;;  %vm266_vm12 = vcmask 855816   ;;  %vm288_vm13 = vmor %vm287_vm10, %vm286_vm9  ;;  %vm293_vm14 = vcmask 134216   ;;  %vm298_vm15 = vcmask 216216   ;;  %vm303_vm0 = vcmask 298216  }
   0xd   :  { %53 = vperm.xlu0 %1440, %v50_v18   ;;  %1441 = vset.pattern.permute.xlu1 %v1469_v19  ;;  %s1478_s29 = smov 127   ;;  %s1479_s30 = smov 1   ;;  %vm308_vm1 = vcmask 380216   ;;  %v455_v60 = vld [vmem:[%s2048_s4] sm:$0xff]  ;;  %vm386_vm9 = vcmask 916480   ;;  %vm425_vm10 = vcmask 834560  }
   0xe   :  { %s1480_s10 = smov 41   ;;  %s1481_s11 = smov 5  }
   0xf   :  { %s1482_s12 = smov 3   ;;  %s1483_s13 = smov 9  }
  0x10   :  { %s1484_s14 = smov 7   ;;  %s1485_s15 = smov 13  }
  0x11   :  { %s1486_s16 = smov 11   ;;  %s1487_s17 = smov 101  }
  0x12   :  { %s1488_s18 = smov 102   ;;  %s1489_s19 = smov 103  }
  0x13   :  { %s1490_s20 = smov 111   ;;  %s1491_s21 = smov 112  }
  0x14   :  { %s1492_s22 = smov 113   ;;  %s1493_s23 = smov 121  }
  0x88   :  { %v54_v20 = vpop.permute.xlu0 %53 }
  0xcb   :  { %v139_v21 = vpop.f32.mrf.mxu0  ;;  %v210_v22 = vpop.f32.mrf.mxu1 }
  0xcc   :  { %v140_v23 = vadd.f32 %v139_v21, %v54_v20  ;;  %v211_v28 = vadd.f32 %v210_v22, %v54_v20 }
  0xcd   :  { %v141_v24 = vpop.f32.mrf.mxu0  ;;  %v212_v25 = vpop.f32.mrf.mxu1 }
  0xce   :  { %v142_v26 = vadd.f32 %v141_v24, %v54_v20  ;;  %217 = vrot.lane.b32.xlu0 %v140_v23, %s1470_s0  ;;  %v213_v27 = vadd.f32 %v212_v25, %v54_v20 }
  0xd0   :  { %222 = vrot.lane.b32.xlu1 %v142_v26, %s1470_s0 }
  0xd2   :  { %274 = vrot.lane.b32.xlu0 %v213_v27, %s1470_s0 }
  0xd4   :  { %269 = vrot.lane.b32.xlu1 %v211_v28, %s1470_s0  ;;  %s1494_s0 = smov 123  }
 0x140   :  { %v218_v29 = vpop.permute.xlu0 %217 }
 0x141   :  { %v220_v31 = vmax.f32 %v140_v23, %v218_v29 }
 0x142   :  { %v223_v30 = vpop.permute.xlu1 %222 }
 0x143   :  { %v225_v32 = vmax.f32 %v142_v26, %v223_v30 }
 0x144   :  { %v275_v35 = vpop.permute.xlu0 %274 }
 0x145   :  { %v226_v33 = vmax.f32 %v220_v31, %v225_v32  ;;  %v277_v37 = vmax.f32 %v213_v27, %v275_v35 }
 0x146   :  { %v270_v34 = vpop.permute.xlu1 %269 }
 0x147   :  { %233 = vrot.lane.b32.xlu0 %v226_v33, %s1471_s1  ;;  %228 = vrot.lane.b32.xlu1 %v226_v33, %s1472_s2  ;;  %v272_v36 = vmax.f32 %v211_v28, %v270_v34  ;;  %s1495_s1 = smov 122   ;;  %v444_v34 = vld [vmem:[%s2047_s3] sm:$0xff] }
 0x149   :  { %v278_v38 = vmax.f32 %v272_v36, %v277_v37  ;;  %v742_v36 = vld [vmem:[%s2049_s5 + $0xf8] sm:$0xff]  ;;  %v1496_v37 = vmov 1983009808  }
 0x14a   :  { %1264 = vmatprep.subr.mxu1 %v742_v36  ;;  %v749_v36 = vld [vmem:[%s2049_s5 + $0x130] sm:$0xff] }
 0x14b   :  { %243 = vrot.lane.b32.xlu0 %v226_v33, %s1473_s24  ;;  %238 = vrot.lane.b32.xlu1 %v226_v33, %s1474_s25 }
 0x14f   :  { %253 = vrot.lane.b32.xlu0 %v226_v33, %s1475_s26  ;;  %248 = vrot.lane.b32.xlu1 %v226_v33, %s1476_s27  ;;  %s1497_s26 = smov 72   ;;  %s1498_s27 = smov 100  }
 0x153   :  { %258 = vrot.lane.b32.xlu0 %v226_v33, %s1477_s28  ;;  %280 = vrot.lane.b32.xlu1 %v278_v38, %s1478_s29 }
 0x157   :  { %290 = vrot.lane.b32.xlu0 %v278_v38, %s1479_s30  ;;  %263 = vrot.lane.b32.xlu1 %v226_v33, %s1480_s10 }
 0x15b   :  { %300 = vrot.lane.b32.xlu0 %v278_v38, %s1481_s11  ;;  %295 = vrot.lane.b32.xlu1 %v278_v38, %s1482_s12  ;;  %s1501_s12 = smov 44  }
 0x15f   :  { %310 = vrot.lane.b32.xlu0 %v278_v38, %s1483_s13  ;;  %305 = vrot.lane.b32.xlu1 %v278_v38, %s1484_s14 }
 0x163   :  { %320 = vrot.lane.b32.xlu0 %v278_v38, %s1485_s15  ;;  %315 = vrot.lane.b32.xlu1 %v278_v38, %s1486_s16  ;;  %v547_v38 = vunpack.c.l.s4 %v1496_v37 }
 0x1b9   :  { %v229_v39 = vpop.permute.xlu1 %228  ;;  %v234_v40 = vpop.permute.xlu0 %233 }
 0x1ba   :  { %232 = vst.msk [vmem:[#allocation2] sm:$0xf] %vm231_vm2, %v229_v39  ;;  %vm313_vm2 = vcmask 462216   ;;  %v549_v39 = vlaneseq }
 0x1bb   :  { %237 = vst.msk [vmem:[#allocation2] sm:$0xf] %vm236_vm3, %v234_v40  ;;  %vm318_vm3 = vcmask 544216   ;;  %v726_v40 = vld [vmem:[%s2049_s5 + $0x78] sm:$0xff] }
 0x1bc   :  { %1265 = vmatpush3.msra.mxu1 %v726_v40  ;;  %v764_v40 = vld [vmem:[%s2049_s5 + $0x1a8] sm:$0xff] }
 0x1bd   :  { %v239_v41 = vpop.permute.xlu1 %238  ;;  %v244_v42 = vpop.permute.xlu0 %243 }
 0x1be   :  { %242 = vst.msk [vmem:[#allocation2] sm:$0xf] %vm241_vm4, %v239_v41  ;;  %vm323_vm4 = vcmask 626216   ;;  %v548_v41 = vunpack.c.0.s8 %v547_v38 }
 0x1bf   :  { %247 = vst.msk [vmem:[#allocation2] sm:$0xf] %vm246_vm5, %v244_v42  ;;  %vm351_vm5 = vcmask 588804   ;;  %v550_v42 = vshrl.u32 %v549_v39, 7  ;;  %v731_v39 = vld [vmem:[%s2049_s5 + $0xa0] sm:$0xff] }
 0x1c1   :  { %v249_v43 = vpop.permute.xlu1 %248  ;;  %v254_v44 = vpop.permute.xlu0 %253 }
 0x1c2   :  { %252 = vst.msk [vmem:[#allocation2] sm:$0xf] %vm251_vm6, %v249_v43  ;;  %vm337_vm6 = vcmask 584704   ;;  %v741_v43 = vld [vmem:[%s2049_s5 + $0xf0] sm:$0xff] }
 0x1c3   :  { %257 = vst.msk [vmem:[#allocation2] sm:$0xf] %vm256_vm7, %v254_v44  ;;  %vm438_vm7 = vcmask 826368   ;;  %v774_v44 = vld [vmem:[%s2049_s5 + $0x1f8] sm:$0xff]  ;;  %1266 = vmatprep.subr.mxu1 %v741_v43 }
 0x1c4   :  { %v730_v43 = vld [vmem:[%s2049_s5 + $0x98] sm:$0xff] }
 0x1c5   :  { %v281_v45 = vpop.permute.xlu1 %280  ;;  %v259_v46 = vpop.permute.xlu0 %258 }
 0x1c6   :  { %v282_v47 = vrot.slane %v281_v45, 4  ;;  %262 = vst.msk [vmem:[#allocation2] sm:$0xf] %vm261_vm8, %v259_v46  ;;  %vm412_vm8 = vcmask 842752   ;;  %v758_v46 = vld [vmem:[%s2049_s5 + $0x178] sm:$0xff] }
 0x1c8   :  { %v284_v50 = vsel %vm283_vm11, %v282_v47, %v281_v45  ;;  %vm465_vm11 = vcmask 1043456   ;;  %v725_v45 = vld [vmem:[%s2049_s5 + $0x70] sm:$0xff]  ;;  %v740_v47 = vld [vmem:[%s2049_s5 + $0xe8] sm:$0xff] }
 0x1c9   :  { %v264_v48 = vpop.permute.xlu1 %263  ;;  %v291_v49 = vpop.permute.xlu0 %290  ;;  %1267 = vmatpush3.msra.mxu1 %v725_v45 }
 0x1ca   :  { %267 = vst.msk [vmem:[#allocation2] sm:$0xf] %vm266_vm12, %v264_v48  ;;  %vm360_vm12 = vcmask 990208   ;;  %v773_v48 = vld [vmem:[%s2049_s5 + $0x1f0] sm:$0xff]  ;;  %1268 = vmatprep.subr.mxu1 %v740_v47  ;;  %v747_v47 = vld [vmem:[%s2049_s5 + $0x120] sm:$0xff] }
 0x1cb   :  { %289 = vst.msk [vmem:[#allocation2] sm:$0xff] %vm288_vm13, %v284_v50  ;;  %vm399_vm13 = vcmask 908288   ;;  %v724_v50 = vld [vmem:[%s2049_s5 + $0x68] sm:$0xff] }
 0x1cc   :  { %294 = vst.msk [vmem:[#allocation2 + $0x4] sm:$0xf] %vm293_vm14, %v291_v49  ;;  %vm373_vm14 = vcmask 924672   ;;  %1269 = vmatpush3.msra.mxu1 %v724_v50  ;;  %v713_v50 = vld [vmem:[%s2049_s5 + $0x10] sm:$0xff] }
 0x1cd   :  { %v296_v51 = vpop.permute.xlu1 %295  ;;  %v301_v52 = vpop.permute.xlu0 %300 }
 0x1ce   :  { %299 = vst.msk [vmem:[#allocation2 + $0x4] sm:$0xf] %vm298_vm15, %v296_v51  ;;  %vm332_vm15 = vcmask 1006592   ;;  %v757_v51 = vld [vmem:[%s2049_s5 + $0x170] sm:$0xff] }
 0x1cf   :  { %304 = vst.msk [vmem:[#allocation2 + $0x4] sm:$0xf] %vm303_vm0, %v301_v52  ;;  %vm346_vm0 = vcmask 998400   ;;  %v1660_v52 = vsub.s32 %v548_v41, %v550_v42  ;;  %v715_v41 = vld [vmem:[%s2049_s5 + $0x20] sm:$0xff]  ;;  %v748_v42 = vld [vmem:[%s2049_s5 + $0x128] sm:$0xff] }
 0x1d1   :  { %v306_v53 = vpop.permute.xlu1 %305  ;;  %v311_v54 = vpop.permute.xlu0 %310 }
 0x1d2   :  { %309 = vst.msk [vmem:[#allocation2 + $0x4] sm:$0xf] %vm308_vm1, %v306_v53  ;;  %vm461_vm1 = vcmask 293888   ;;  %v739_v53 = vld [vmem:[%s2049_s5 + $0xe0] sm:$0xff] }
 0x1d3   :  { %314 = vst.msk [vmem:[#allocation2 + $0x4] sm:$0xf] %vm313_vm2, %v311_v54  ;;  %v772_v54 = vld [vmem:[%s2049_s5 + $0x1e8] sm:$0xff]  ;;  %vm543_vm2 = vcmask 811008   ;;  %1270 = vmatprep.subr.mxu1 %v739_v53 }
 0x1d5   :  { %v316_v55 = vpop.permute.xlu1 %315  ;;  %v321_v56 = vpop.permute.xlu0 %320 }
 0x1d6   :  { %319 = vst.msk [vmem:[#allocation2 + $0x4] sm:$0xf] %vm318_vm3, %v316_v55  ;;  %vm561_vm3 = vcmask 1041184  }
 0x1d7   :  { %324 = vst.msk [vmem:[#allocation2 + $0x4] sm:$0xf] %vm323_vm4, %v321_v56  ;;  %v723_v56 = vld [vmem:[%s2049_s5 + $0x60] sm:$0xff]  ;;  %vm562_vm4 = vcmask 583682  }
 0x1d8   :  { %1271 = vmatpush3.msra.mxu1 %v723_v56  ;;  %v761_v56 = vld [vmem:[%s2049_s5 + $0x190] sm:$0xff] }
 0x1de   :  { %v431_v57 = vld [vmem:[#allocation2] sm:$0xff] }
 0x1df   :  { %434 = vrot.lane.b32.xlu1 %v431_v57, %s1487_s17  ;;  %423 = vrot.lane.b32.xlu0 %v431_v57, %s1488_s18  ;;  %v433_v58 = vcombine.high %v431_v57, %v431_v57  ;;  %v420_v59 = vcombine.low %v431_v57, %v431_v57 }
 0x1e3   :  { %408 = vrot.lane.b32.xlu1 %v431_v57, %s1489_s19  ;;  %397 = vrot.lane.b32.xlu0 %v431_v57, %s1490_s20 }
 0x1e7   :  { %382 = vrot.lane.b32.xlu1 %v431_v57, %s1491_s21  ;;  %371 = vrot.lane.b32.xlu0 %v431_v57, %s1492_s22 }
 0x1eb   :  { %436 = vrot.lane.b32.xlu0 %v433_v58, %s1487_s17  ;;  %356 = vrot.lane.b32.xlu1 %v431_v57, %s1493_s23  ;;  %s1506_s17 = smov [#allocation5]  }
 0x1ef   :  { %410 = vrot.lane.b32.xlu0 %v433_v58, %s1489_s19  ;;  %328 = vrot.lane.b32.xlu1 %v431_v57, %s1494_s0 }
 0x1f3   :  { %384 = vrot.lane.b32.xlu0 %v433_v58, %s1491_s21  ;;  %421 = vrot.lane.b32.xlu1 %v420_v59, %s1488_s18  ;;  %s1235_s18 = sshll.u32 %s1506_s17, 4  ;;  %s1236_s18 = int_to_ptr.vmem [resolvable:$true] %s1235_s18 }
 0x1f4   :  { %p1451_p1 = scmp.lt.s32.totalorder %s1236_s18, %s1236_s18 }
 0x1f7   :  { %358 = vrot.lane.b32.xlu0 %v433_v58, %s1493_s23  ;;  %395 = vrot.lane.b32.xlu1 %v420_v59, %s1490_s20  ;;  %s1500_s23 = smov 116  }
 0x1fb   :  { %369 = vrot.lane.b32.xlu1 %v420_v59, %s1492_s22  ;;  %330 = vrot.lane.b32.xlu0 %v433_v58, %s1494_s0  ;;  %s1499_s22 = smov 28  }
 0x1ff   :  { %342 = vrot.lane.b32.xlu1 %v420_v59, %s1495_s1  ;;  %344 = vrot.lane.b32.xlu0 %v431_v57, %s1495_s1  ;;  %v756_v57 = vld [vmem:[%s2049_s5 + $0x168] sm:$0xff]  ;;  %v738_v59 = vld [vmem:[%s2049_s5 + $0xd8] sm:$0xff]  ;;  %s1503_s1 = smov 88  }
 0x200   :  { %1272 = vmatprep.subr.mxu1 %v738_v59  ;;  %v727_v59 = vld [vmem:[%s2049_s5 + $0x80] sm:$0xff] }
 0x203   :  { %458 = vperm.xlu1 %1441, %v455_v60   ;;  %v771_v60 = vld [vmem:[%s2049_s5 + $0x1e0] sm:$0xff] }
 0x251   :  { %v435_v61 = vpop.permute.xlu1 %434  ;;  %v424_v62 = vpop.permute.xlu0 %423 }
 0x252   :  { %430 = vst.msk [vmem:[#allocation3 + $0x38] sm:$0xf0] %vm351_vm5, %v424_v62 }
 0x255   :  { %v409_v63 = vpop.permute.xlu1 %408  ;;  %v398_v0 = vpop.permute.xlu0 %397 }
 0x256   :  { %404 = vst.msk [vmem:[#allocation3 + $0x28] sm:$0xf0] %vm351_vm5, %v398_v0 }
 0x259   :  { %v383_v1 = vpop.permute.xlu1 %382  ;;  %v372_v2 = vpop.permute.xlu0 %371 }
 0x25a   :  { %378 = vst.msk [vmem:[#allocation3 + $0x18] sm:$0xf0] %vm351_vm5, %v372_v2 }
 0x25d   :  { %v437_v3 = vpop.permute.xlu0 %436  ;;  %v357_v4 = vpop.permute.xlu1 %356 }
 0x25e   :  { %v439_v5 = vsel %vm438_vm7, %v435_v61, %v437_v3  ;;  %443 = vst.msk [vmem:[#allocation3 + $0x48] sm:$0xf] %vm337_vm6, %v437_v3  ;;  %v737_v3 = vld [vmem:[%s2049_s5 + $0xd0] sm:$0xff]  ;;  %vm569_vm7 = vcmask 588800  }
 0x25f   :  { %442 = vst [vmem:[#allocation3 + $0x40] sm:$0xf] %v439_v5  ;;  %v721_v5 = vld [vmem:[%s2049_s5 + $0x50] sm:$0xff] }
 0x261   :  { %v411_v6 = vpop.permute.xlu0 %410  ;;  %v329_v7 = vpop.permute.xlu1 %328 }
 0x262   :  { %v413_v8 = vsel %vm412_vm8, %v409_v63, %v411_v6  ;;  %417 = vst.msk [vmem:[#allocation3 + $0x38] sm:$0xf] %vm337_vm6, %v411_v6  ;;  %v755_v63 = vld [vmem:[%s2049_s5 + $0x160] sm:$0xff]  ;;  %v754_v6 = vld [vmem:[%s2049_s5 + $0x158] sm:$0xff]  ;;  %vm558_vm8 = vcmask 818176  }
 0x263   :  { %416 = vst [vmem:[#allocation3 + $0x30] sm:$0xf] %v413_v8 }
 0x265   :  { %v385_v10 = vpop.permute.xlu0 %384  ;;  %v422_v11 = vpop.permute.xlu1 %421  ;;  %v454_v12 = vld [vmem:[#allocation3 + $0x48] sm:$0xf] }
 0x266   :  { %v387_v13 = vsel %vm386_vm9, %v383_v1, %v385_v10  ;;  %391 = vst.msk [vmem:[#allocation3 + $0x28] sm:$0xf] %vm337_vm6, %v385_v10  ;;  %v426_v14 = vsel %vm425_vm10, %v422_v11, %v424_v62  ;;  %1249 = vmatprep.subr.msk.mxu0 %vm465_vm11, %v454_v12  ;;  %v453_v15 = vld [vmem:[#allocation3 + $0x40] sm:$0xf]  ;;  %v722_v62 = vld [vmem:[%s2049_s5 + $0x58] sm:$0xff]  ;;  %v769_v12 = vld [vmem:[%s2049_s5 + $0x1d0] sm:$0xff] }
 0x267   :  { %390 = vst [vmem:[#allocation3 + $0x20] sm:$0xf] %v387_v13  ;;  %429 = vst [vmem:[#allocation3 + $0x30] sm:$0xf0] %v426_v14  ;;  %1250 = vmatpush1.msk.msra.mxu0 %vm465_vm11, %v453_v15  ;;  %1273 = vmatpush3.msra.mxu1 %v722_v62  ;;  %v736_v11 = vld [vmem:[%s2049_s5 + $0xc8] sm:$0xff]  ;;  %v753_v15 = vld [vmem:[%s2049_s5 + $0x150] sm:$0xff] }
 0x268   :  { %1274 = vmatprep.subr.mxu1 %v737_v3  ;;  %v720_v14 = vld [vmem:[%s2049_s5 + $0x48] sm:$0xff]  ;;  %v743_v3 = vld [vmem:[%s2049_s5 + $0x100] sm:$0xff]  ;;  %vm1862_vm9 = vmor %vm562_vm4, %vm561_vm3  ;;  %vm648_vm11 = vcmask 228352   ;;  %vm599_vm3 = vcmask 942208  }
 0x269   :  { %v359_v16 = vpop.permute.xlu0 %358  ;;  %v396_v17 = vpop.permute.xlu1 %395  ;;  %v452_v18 = vld [vmem:[#allocation3 + $0x38] sm:$0xff]  ;;  %1275 = vmatpush3.msra.mxu1 %v721_v5 }
 0x26a   :  { %v361_v19 = vsel %vm360_vm12, %v357_v4, %v359_v16  ;;  %365 = vst.msk [vmem:[#allocation3 + $0x18] sm:$0xf] %vm337_vm6, %v359_v16  ;;  %v400_v20 = vsel %vm399_vm13, %v396_v17, %v398_v0  ;;  %496 = vmatprep.subr.mxu0 %v452_v18  ;;  %v770_v4 = vld [vmem:[%s2049_s5 + $0x1d8] sm:$0xff]  ;;  %1276 = vmatprep.subr.mxu1 %v736_v11  ;;  %v735_v16 = vld [vmem:[%s2049_s5 + $0xc0] sm:$0xff]  ;;  %v768_v17 = vld [vmem:[%s2049_s5 + $0x1c8] sm:$0xff]  ;;  %vm584_vm12 = vcmask 1040736  }
 0x26b   :  { %364 = vst [vmem:[#allocation3 + $0x10] sm:$0xf] %v361_v19  ;;  %403 = vst [vmem:[#allocation3 + $0x20] sm:$0xf0] %v400_v20  ;;  %1277 = vmatpush3.msra.mxu1 %v720_v14  ;;  %v719_v18 = vld [vmem:[%s2049_s5 + $0x40] sm:$0xff]  ;;  %v752_v19 = vld [vmem:[%s2049_s5 + $0x148] sm:$0xff] }
 0x26c   :  { %1278 = vmatprep.subr.mxu1 %v735_v16  ;;  %vm585_vm13 = vcmask 124930  }
 0x26d   :  { %v370_v21 = vpop.permute.xlu1 %369  ;;  %v331_v22 = vpop.permute.xlu0 %330  ;;  %v450_v26 = vld [vmem:[#allocation3 + $0x28] sm:$0xff]  ;;  %1279 = vmatpush3.msra.mxu1 %v719_v18 }
 0x26e   :  { %v374_v23 = vsel %vm373_vm14, %v370_v21, %v372_v2  ;;  %v333_v24 = vsel %vm332_vm15, %v329_v7, %v331_v22  ;;  %338 = vst.msk [vmem:[#allocation3 + $0x8] sm:$0xf] %vm337_vm6, %v331_v22  ;;  %v451_v25 = vld [vmem:[#allocation3 + $0x30] sm:$0xff]  ;;  %vm573_vm6 = vcmask 354306   ;;  %vm581_vm14 = vcmask 359424   ;;  %vm1880_vm15 = vmor %vm585_vm13, %vm584_vm12 }
 0x26f   :  { %377 = vst [vmem:[#allocation3 + $0x10] sm:$0xf0] %v374_v23  ;;  %336 = vst [vmem:[#allocation3] sm:$0xf] %v333_v24  ;;  %497 = vmatpush1.msra.mxu0 %v451_v25  ;;  %v734_v22 = vld [vmem:[%s2049_s5 + $0xb8] sm:$0xff]  ;;  %v767_v23 = vld [vmem:[%s2049_s5 + $0x1c0] sm:$0xff] }
 0x270   :  { %498 = vmatprep.subr.mxu0 %v450_v26  ;;  %v718_v24 = vld [vmem:[%s2049_s5 + $0x38] sm:$0xff]  ;;  %v751_v25 = vld [vmem:[%s2049_s5 + $0x140] sm:$0xff]  ;;  %v733_v26 = vld [vmem:[%s2049_s5 + $0xb0] sm:$0xff]  ;;  %1280 = vmatprep.subr.mxu1 %v734_v22  ;;  %vm629_vm12 = vcmask 490496  }
 0x271   :  { %v343_v27 = vpop.permute.xlu1 %342  ;;  %v345_v28 = vpop.permute.xlu0 %344  ;;  %v448_v31 = vld [vmem:[#allocation3 + $0x18] sm:$0xff]  ;;  %1281 = vmatpush3.msra.mxu1 %v718_v24 }
 0x272   :  { %v347_v29 = vsel %vm346_vm0, %v343_v27, %v345_v28  ;;  %352 = vst.msk [vmem:[#allocation3 + $0x8] sm:$0xf0] %vm351_vm5, %v345_v28  ;;  %v449_v30 = vld [vmem:[#allocation3 + $0x20] sm:$0xff]  ;;  %v766_v27 = vld [vmem:[%s2049_s5 + $0x1b8] sm:$0xff]  ;;  %1282 = vmatprep.subr.mxu1 %v733_v26  ;;  %vm572_vm5 = vcmask 1040960   ;;  %vm609_vm0 = vcmask 1041312  }
 0x273   :  { %350 = vst [vmem:[#allocation3] sm:$0xf0] %v347_v29  ;;  %499 = vmatpush1.msra.mxu0 %v449_v30  ;;  %vm1866_vm10 = vmor %vm573_vm6, %vm572_vm5  ;;  %vm690_vm5 = vcmask 130048   ;;  %vm620_vm6 = vcmask 1041088  }
 0x274   :  { %500 = vmatprep.subr.mxu0 %v448_v31  ;;  %v717_v31 = vld [vmem:[%s2049_s5 + $0x30] sm:$0xff] }
 0x275   :  { %1283 = vmatpush3.msra.mxu1 %v717_v31 }
 0x276   :  { %v447_v32 = vld [vmem:[#allocation3 + $0x10] sm:$0xff] }
 0x277   :  { %501 = vmatpush1.msra.mxu0 %v447_v32  ;;  %v750_v32 = vld [vmem:[%s2049_s5 + $0x138] sm:$0xff] }
 0x279   :  { %v446_v33 = vld [vmem:[#allocation3 + $0x8] sm:$0xff] }
 0x27a   :  { %502 = vmatprep.subr.mxu0 %v446_v33  ;;  %v445_v35 = vld [vmem:[#allocation3] sm:$0xff] }
 0x27b   :  { %503 = vmatpush1.msra.mxu0 %v445_v35  ;;  %v732_v33 = vld [vmem:[%s2049_s5 + $0xa8] sm:$0xff] }
 0x27c   :  { %1251 = vmatmul.mubr.msk.f32.vlgmr.msra.gmra.mxu0 %vm461_vm1, %v444_v34  ;;  %1299 = vmatprep.subr.mxu0 %v774_v44  ;;  %v765_v34 = vld [vmem:[%s2049_s5 + $0x1b0] sm:$0xff]  ;;  %v716_v35 = vld [vmem:[%s2049_s5 + $0x28] sm:$0xff]  ;;  %v763_v44 = vld [vmem:[%s2049_s5 + $0x1a0] sm:$0xff]  ;;  %vm610_vm1 = vcmask 714754  }
 0x27d   :  { %1300 = vmatpush3.msra.mxu0 %v758_v46  ;;  %1284 = vmatprep.subr.mxu1 %v732_v33  ;;  %v714_v46 = vld [vmem:[%s2049_s5 + $0x18] sm:$0xff]  ;;  %vm611_vm4 = vmor %vm610_vm1, %vm609_vm0  ;;  %vm1227_vm0 = vcmask 74752  }
 0x27e   :  { %v459_v49 = vpop.permute.xlu1 %458  ;;  %1301 = vmatprep.subr.mxu0 %v773_v48  ;;  %1285 = vmatpush3.msra.mxu1 %v716_v35  ;;  %v729_v48 = vld [vmem:[%s2049_s5 + $0x90] sm:$0xff] }
 0x27f   :  { %1302 = vmatpush3.msra.mxu0 %v757_v51  ;;  %1286 = vmatprep.subr.mxu1 %v731_v39  ;;  %v746_v51 = vld [vmem:[%s2049_s5 + $0x118] sm:$0xff] }
 0x280   :  { %1303 = vmatprep.subr.mxu0 %v772_v54  ;;  %1287 = vmatpush3.msra.mxu1 %v715_v41 }
 0x281   :  { %1304 = vmatpush3.msra.mxu0 %v756_v57  ;;  %1288 = vmatprep.subr.mxu1 %v730_v43  ;;  %v712_v57 = vld [vmem:[%s2049_s5 + $0x8] sm:$0xff] }
 0x282   :  { %1305 = vmatprep.subr.mxu0 %v771_v60  ;;  %1289 = vmatpush3.msra.mxu1 %v714_v46  ;;  %v760_v60 = vld [vmem:[%s2049_s5 + $0x188] sm:$0xff] }
 0x283   :  { %1306 = vmatpush3.msra.mxu0 %v755_v63  ;;  %1290 = vmatprep.subr.mxu1 %v729_v48  ;;  %v711_v63 = vld [vmem:[%s2049_s5] sm:$0xff] }
 0x284   :  { %1307 = vmatprep.subr.mxu0 %v770_v4  ;;  %1291 = vmatpush3.msra.mxu1 %v713_v50 }
 0x285   :  { %1308 = vmatpush3.msra.mxu0 %v754_v6 }
 0x286   :  { %1309 = vmatprep.subr.mxu0 %v769_v12 }
 0x287   :  { %1310 = vmatpush3.msra.mxu0 %v753_v15 }
 0x288   :  { %1311 = vmatprep.subr.mxu0 %v768_v17 }
 0x289   :  { %1312 = vmatpush3.msra.mxu0 %v752_v19 }
 0x28a   :  { %1313 = vmatprep.subr.mxu0 %v767_v23  ;;  %v795_v23 = vld [vmem:[%s2049_s5 + $0x2a0] sm:$0xff] }
 0x28b   :  { %1314 = vmatpush3.msra.mxu0 %v751_v25 }
 0x28c   :  { %1315 = vmatprep.subr.mxu0 %v766_v27 }
 0x28d   :  { %1316 = vmatpush3.msra.mxu0 %v750_v32 }
 0x28e   :  { %1317 = vmatprep.subr.mxu0 %v765_v34 }
 0x28f   :  { %1318 = vmatpush3.msra.mxu0 %v749_v36 }
 0x290   :  { %1319 = vmatprep.subr.mxu0 %v764_v40 }
 0x291   :  { %1320 = vmatpush3.msra.mxu0 %v748_v42 }
 0x292   :  { %1321 = vmatprep.subr.mxu0 %v763_v44 }
 0x293   :  { %1322 = vmatpush3.msra.mxu0 %v747_v47 }
 0x33c   :  { %v538_v55 = vpop.f32.mrf.mxu0 }
 0x33d   :  { %v1674_v58 = vadd.f32 %v538_v55, %v459_v49  ;;  %v728_v55 = vld [vmem:[%s2049_s5 + $0x88] sm:$0xff] }
 0x33e   :  { %v540_v61 = vpop.f32.mrf.mxu0  ;;  %1292 = vmatprep.subr.mxu1 %v728_v55  ;;  %v790_v55 = vld [vmem:[%s2049_s5 + $0x278] sm:$0xff] }
 0x33f   :  { %v1688_v0 = vadd.f32 %v540_v61, %v459_v49  ;;  %v552_v1 = vrot.slane %v1674_v58, %v1660_v52  ;;  %v588_v2 = vcombine.high %v1674_v58, %v1674_v58  ;;  %544 = vst.msk [vmem:[#allocation4] sm:$0x1] %vm543_vm2, %v1674_v58  ;;  %v762_v49 = vld [vmem:[%s2049_s5 + $0x198] sm:$0xff]  ;;  %1293 = vmatpush3.msra.mxu1 %v712_v57  ;;  %v805_v57 = vld [vmem:[%s2049_s5 + $0x2f0] sm:$0xff] }
 0x340   :  { %1323 = vmatprep.subr.mxu0 %v762_v49  ;;  %1294 = vmatprep.subr.mxu1 %v727_v59  ;;  %v810_v59 = vld [vmem:[%s2049_s5 + $0x318] sm:$0xff] }
 0x341   :  { %v637_v7 = vcombine.low %v1674_v58, %v1688_v0  ;;  %v565_v8 = vcombine.high %v552_v1, %v552_v1  ;;  %v1252_v10 = vrot.slane %v552_v1, 9  ;;  %v1717_v13 = vrot.slane %v588_v2, %v1660_v52  ;;  %1324 = vmatpush3.msra.mxu0 %v746_v51  ;;  %v759_v1 = vld [vmem:[%s2049_s5 + $0x180] sm:$0xff]  ;;  %v806_v2 = vld [vmem:[%s2049_s5 + $0x2f8] sm:$0xff]  ;;  %1295 = vmatpush3.msra.mxu1 %v711_v63 }
 0x342   :  { %v671_v28 = vcombine.high %v1674_v58, %v1688_v0  ;;  %v745_v58 = vld [vmem:[%s2049_s5 + $0x110] sm:$0xff]  ;;  %1325 = vmatprep.subr.mxu0 %v761_v56  ;;  %v744_v0 = vld [vmem:[%s2049_s5 + $0x108] sm:$0xff]  ;;  %1334 = vmatprep.subr.mxu1 %v806_v2  ;;  %v787_v2 = vld [vmem:[%s2049_s5 + $0x260] sm:$0xff] }
 0x343   :  { %566 = vrot.lane.b32.xlu0 %v565_v8, %s1497_s26  ;;  %555 = vrot.lane.b32.xlu1 %v1252_v10, %s1498_s27  ;;  %v1740_v20 = vrot.slane %v637_v7, %v1660_v52  ;;  %v1254_v21 = vrot.slane %v1717_v13, 9  ;;  %v1253_v29 = vrot.slane %v565_v8, 9  ;;  %v613_v53 = vcombine.high %v1717_v13, %v1717_v13  ;;  %v807_v8 = vld [vmem:[%s2049_s5 + $0x300] sm:$0xff]  ;;  %v801_v10 = vld [vmem:[%s2049_s5 + $0x2d0] sm:$0xff] }
 0x344   :  { %v678_v37 = vrot.slane %v671_v28, %v1660_v52  ;;  %1326 = vmatpush3.msra.mxu0 %v745_v58  ;;  %v789_v58 = vld [vmem:[%s2049_s5 + $0x270] sm:$0xff] }
 0x345   :  { %v656_v30 = vcombine.high %v1740_v20, %v1740_v20  ;;  %v1255_v61 = vrot.slane %v613_v53, 9  ;;  %1327 = vmatprep.subr.mxu0 %v760_v60  ;;  %v1256_v16 = vrot.slane %v1740_v20, 9  ;;  %v804_v60 = vld [vmem:[%s2049_s5 + $0x2e8] sm:$0xff] }
 0x346   :  { %v1258_v45 = vrot.slane %v678_v37, 9  ;;  %v694_v54 = vcombine.high %v678_v37, %v678_v37  ;;  %1328 = vmatpush3.msra.mxu0 %v744_v0  ;;  %v803_v0 = vld [vmem:[%s2049_s5 + $0x2e0] sm:$0xff] }
 0x347   :  { %645 = vrot.lane.b32.xlu0 %v1740_v20, %s1499_s22  ;;  %603 = vrot.lane.b32.xlu1 %v1254_v21, %s1500_s23  ;;  %v1257_v38 = vrot.slane %v656_v30, 9 }
 0x348   :  { %v1259_v62 = vrot.slane %v694_v54, 9  ;;  %1329 = vmatprep.subr.mxu0 %v759_v1 }
 0x349   :  { %1330 = vmatpush3.msra.mxu0 %v743_v3  ;;  %v808_v3 = vld [vmem:[%s2049_s5 + $0x308] sm:$0xff] }
 0x34a   :  { %1379 = vmatprep.subr.mxu0 %v1468_v9 }
 0x34b   :  { %578 = vrot.lane.b32.xlu0 %v1253_v29, %s1501_s12  ;;  %657 = vrot.lane.b32.xlu1 %v656_v30, %s1498_s27 }
 0x34f   :  { %679 = vrot.lane.b32.xlu0 %v678_v37, %s1501_s12  ;;  %665 = vrot.lane.b32.xlu1 %v1257_v38, %s1497_s26  ;;  %s1502_s12 = smov 16  }
 0x353   :  { %687 = vrot.lane.b32.xlu0 %v1258_v45, %s1502_s12  ;;  %596 = vrot.lane.b32.xlu1 %v1717_v13, %s1502_s12  ;;  %s1504_s12 = smov 60  }
 0x357   :  { %614 = vrot.lane.b32.xlu0 %v613_v53, %s1503_s1  ;;  %695 = vrot.lane.b32.xlu1 %v694_v54, %s1500_s23 }
 0x35b   :  { %626 = vrot.lane.b32.xlu0 %v1255_v61, %s1504_s12  ;;  %703 = vrot.lane.b32.xlu1 %v1259_v62, %s1503_s1  ;;  %v788_v61 = vld [vmem:[%s2049_s5 + $0x268] sm:$0xff]  ;;  %v809_v62 = vld [vmem:[%s2049_s5 + $0x310] sm:$0xff] }
 0x3b5   :  { %v567_v4 = vpop.permute.xlu0 %566  ;;  %v556_v5 = vpop.permute.xlu1 %555 }
 0x3b6   :  { %v568_v6 = vrot.slane %v567_v4, 6  ;;  %v557_v7 = vrot.slane %v556_v5, 6 }
 0x3b8   :  { %v570_v11 = vsel %vm569_vm7, %v568_v6, %v567_v4  ;;  %v559_v12 = vsel %vm558_vm8, %v557_v7, %v556_v5  ;;  %v802_v4 = vld [vmem:[%s2049_s5 + $0x2d8] sm:$0xff] }
 0x3b9   :  { %v646_v13 = vpop.permute.xlu0 %645  ;;  %564 = vst.msk [vmem:[#allocation4] sm:$0x5] %vm1862_vm9, %v559_v12  ;;  %v604_v14 = vpop.permute.xlu1 %603  ;;  %v786_v7 = vld [vmem:[%s2049_s5 + $0x258] sm:$0xff]  ;;  %v785_v12 = vld [vmem:[%s2049_s5 + $0x250] sm:$0xff] }
 0x3ba   :  { %v647_v15 = vrot.slane %v646_v13, 2  ;;  %575 = vst.msk [vmem:[#allocation4 + $0x2] sm:$0x5] %vm1866_vm10, %v570_v11  ;;  %v605_v27 = vrot.slane %v604_v14, 6 }
 0x3bc   :  { %v649_v17 = vsel %vm648_vm11, %v646_v13, %v647_v15  ;;  %vm633_vm11 = vcmask 256002   ;;  %v800_v13 = vld [vmem:[%s2049_s5 + $0x2c8] sm:$0xff]  ;;  %v783_v15 = vld [vmem:[%s2049_s5 + $0x240] sm:$0xff] }
 0x3bd   :  { %651 = vst.msk [vmem:[#allocation4 + $0x1] sm:$0x1] %vm543_vm2, %v649_v17  ;;  %v579_v18 = vpop.permute.xlu0 %578  ;;  %v658_v19 = vpop.permute.xlu1 %657  ;;  %vm606_vm2 = vcmask 949248   ;;  %v782_v17 = vld [vmem:[%s2049_s5 + $0x238] sm:$0xff] }
 0x3be   :  { %655 = vst.msk [vmem:[#allocation4 + $0x1] sm:$0x5] %vm1862_vm9, %v1256_v16  ;;  %v580_v21 = vrot.slane %v579_v18, 6  ;;  %v659_v22 = vrot.slane %v658_v19, 2  ;;  %v607_v34 = vsel %vm606_vm2, %v605_v27, %v604_v14  ;;  %vm617_vm9 = vcmask 719872   ;;  %v799_v14 = vld [vmem:[%s2049_s5 + $0x2c0] sm:$0xff] }
 0x3bf   :  { %v798_v16 = vld [vmem:[%s2049_s5 + $0x2b8] sm:$0xff]  ;;  %v777_v27 = vld [vmem:[%s2049_s5 + $0x210] sm:$0xff] }
 0x3c0   :  { %v582_v24 = vsel %vm581_vm14, %v580_v21, %v579_v18  ;;  %v660_v25 = vsel %vm558_vm8, %v658_v19, %v659_v22  ;;  %vm621_vm8 = vcmask 485378   ;;  %v797_v18 = vld [vmem:[%s2049_s5 + $0x2b0] sm:$0xff]  ;;  %v796_v21 = vld [vmem:[%s2049_s5 + $0x2a8] sm:$0xff] }
 0x3c1   :  { %662 = vst.msk [vmem:[#allocation4 + $0x3] sm:$0x5] %vm1866_vm10, %v660_v25  ;;  %v680_v20 = vpop.permute.xlu0 %679  ;;  %v666_v26 = vpop.permute.xlu1 %665  ;;  %vm632_vm10 = vcmask 1040864   ;;  %v781_v19 = vld [vmem:[%s2049_s5 + $0x230] sm:$0xff]  ;;  %v780_v22 = vld [vmem:[%s2049_s5 + $0x228] sm:$0xff]  ;;  %v794_v25 = vld [vmem:[%s2049_s5 + $0x298] sm:$0xff] }
 0x3c2   :  { %587 = vst.msk [vmem:[#allocation4 + $0x4] sm:$0x5] %vm1880_vm15, %v582_v24  ;;  %v681_v28 = vrot.slane %v680_v20, 2  ;;  %v667_v29 = vrot.slane %v666_v26, 2  ;;  %vm634_vm13 = vmor %vm633_vm11, %vm632_vm10  ;;  %v779_v24 = vld [vmem:[%s2049_s5 + $0x220] sm:$0xff] }
 0x3c4   :  { %v682_v30 = vsel %vm581_vm14, %v680_v20, %v681_v28  ;;  %v668_v31 = vsel %vm569_vm7, %v666_v26, %v667_v29  ;;  %vm622_vm7 = vmor %vm621_vm8, %vm620_vm6  ;;  %vm859_vm14 = vcmask 261120   ;;  %v778_v20 = vld [vmem:[%s2049_s5 + $0x218] sm:$0xff]  ;;  %v793_v26 = vld [vmem:[%s2049_s5 + $0x290] sm:$0xff] }
 0x3c5   :  { %670 = vst.msk [vmem:[#allocation4 + $0x5] sm:$0x5] %vm1880_vm15, %v668_v31  ;;  %v688_v32 = vpop.permute.xlu0 %687  ;;  %v597_v33 = vpop.permute.xlu1 %596  ;;  %vm1505_vm15 = vmmov 0   ;;  %v792_v28 = vld [vmem:[%s2049_s5 + $0x288] sm:$0xff]  ;;  %v775_v31 = vld [vmem:[%s2049_s5 + $0x200] sm:$0xff] }
 0x3c6   :  { %684 = vst.msk [vmem:[#allocation4 + $0x7] sm:$0x1] %vm599_vm3, %v682_v30  ;;  %v689_v35 = vrot.slane %v688_v32, 6  ;;  %600 = vst.msk [vmem:[#allocation4 + $0x6] sm:$0x1] %vm599_vm3, %v597_v33  ;;  %v776_v29 = vld [vmem:[%s2049_s5 + $0x208] sm:$0xff] }
 0x3c7   :  { %612 = vst.msk [vmem:[#allocation4 + $0x6] sm:$0x5] %vm611_vm4, %v607_v34  ;;  %v791_v30 = vld [vmem:[%s2049_s5 + $0x280] sm:$0xff]  ;;  %v1145_v33 = vld [vmem:[%s2051_s7 + $0x10] sm:$0xff]  ;;  %v1144_v34 = vld [vmem:[%s2051_s7 + $0x8] sm:$0xff] }
 0x3c8   :  { %v691_v36 = vsel %vm690_vm5, %v689_v35, %v688_v32  ;;  %v1146_v32 = vld [vmem:[%s2051_s7 + $0x18] sm:$0xff]  ;;  %v1143_v35 = vld [vmem:[%s2051_s7] sm:$0xff] }
 0x3c9   :  { %693 = vst.msk [vmem:[#allocation4 + $0x7] sm:$0x5] %vm611_vm4, %v691_v36  ;;  %v615_v37 = vpop.permute.xlu0 %614  ;;  %v696_v38 = vpop.permute.xlu1 %695 }
 0x3ca   :  { %v616_v39 = vrot.slane %v615_v37, 6  ;;  %v697_v40 = vrot.slane %v696_v38, 2 }
 0x3cc   :  { %v618_v41 = vsel %vm617_vm9, %v616_v39, %v615_v37  ;;  %v698_v42 = vsel %vm606_vm2, %v696_v38, %v697_v40 }
 0x3cd   :  { %623 = vst.msk [vmem:[#allocation4 + $0x8] sm:$0x5] %vm622_vm7, %v618_v41  ;;  %700 = vst.msk [vmem:[#allocation4 + $0x9] sm:$0x5] %vm622_vm7, %v698_v42  ;;  %v627_v43 = vpop.permute.xlu0 %626  ;;  %v704_v44 = vpop.permute.xlu1 %703 }
 0x3ce   :  { %v628_v45 = vrot.slane %v627_v43, 6  ;;  %v705_v46 = vrot.slane %v704_v44, 2 }
 0x3d0   :  { %v630_v47 = vsel %vm629_vm12, %v628_v45, %v627_v43  ;;  %v706_v48 = vsel %vm617_vm9, %v704_v44, %v705_v46  ;;  %v709_v49 = vld [vmem:[#allocation4] sm:$0xff]  ;;  %v1260_v43 = vld [vmem:[%s2050_s6] ss:$0 sm:$0xff]  ;;  %s1446_s6 = scalar_lea.vmem %s1236_s18, 32 }
 0x3d1   :  { %635 = vst.msk [vmem:[#allocation4 + $0xa] sm:$0x5] %vm634_vm13, %v630_v47  ;;  %708 = vst.msk [vmem:[#allocation4 + $0xb] sm:$0x5] %vm634_vm13, %v706_v48  ;;  %v827_v50 = vrot.slane %v709_v49, %v1660_v52  ;;  %v820_v51 = vcombine.high %v709_v49, %v709_v49  ;;  %p1447_p0 = scmp.ne.s32.totalorder %s1236_s18, %s1446_s6  ;;  %p1452_p2 = scmp.lt.s32.totalorder %s1446_s6, %s1446_s6 }
 0x3d3   :  { %v835_v53 = vcombine.high %v827_v50, %v827_v50  ;;  %v834_v54 = vrot.slane %v820_v51, %v1660_v52  ;;  %p1453_p3 = por %p1452_p2, %p1451_p1 }
 0x3d5   :  { %926 = vmatprep.mubr.f32.mxu1 %v835_v53  ;;  %v836_v56 = vcombine.high %v834_v54, %v834_v54  ;;  %v1262_v53 = vld [vmem:[%s2052_s8] ss:$0 sm:$0xff]  ;;  %p1454_p4 = pnand %p1453_p3, %p1447_p0 }
 0x3d6   :  { %927 = vmatmul.mubr.f32.vlgmr.msra.gmra.mxu1 %v827_v50 }
 0x3d7   :  { %1335 = vmatpush3.msra.mxu1 %v790_v55  ;;  %996 = vmatprep.mubr.f32.mxu0 %v836_v56 }
 0x3d8   :  { %1336 = vmatprep.subr.mxu1 %v805_v57  ;;  %997 = vmatmul.mubr.f32.vlgmr.msra.gmra.mxu0 %v834_v54  ;;  %v710_v63 = vld [vmem:[#allocation4 + $0x8] sm:$0x3f] }
 0x3d9   :  { %1337 = vmatpush3.msra.mxu1 %v789_v58  ;;  %1380 = vmatpush3.msra.mxu0 %v810_v59  ;;  %v1925_v1 = vrot.slane %v710_v63, %v1660_v52  ;;  %v837_v5 = vcombine.high %v710_v63, %v710_v63 }
 0x3da   :  { %1338 = vmatprep.subr.mxu1 %v804_v60  ;;  %1381 = vmatprep.subr.mxu0 %v1468_v9 }
 0x3db   :  { %1339 = vmatpush3.msra.mxu1 %v788_v61  ;;  %1382 = vmatpush3.msra.mxu0 %v809_v62  ;;  %v852_v6 = vcombine.high %v1925_v1, %v1925_v1  ;;  %v851_v11 = vrot.slane %v837_v5, %v1660_v52  ;;  %v784_v52 = vld [vmem:[%s2049_s5 + $0x248] sm:$0xff] }
 0x3dc   :  { %1340 = vmatprep.subr.mxu1 %v803_v0  ;;  %1383 = vmatprep.subr.mxu0 %v1468_v9 }
 0x3dd   :  { %1341 = vmatpush3.msra.mxu1 %v787_v2  ;;  %1384 = vmatpush3.msra.mxu0 %v808_v3 }
 0x3de   :  { %1342 = vmatprep.subr.mxu1 %v802_v4  ;;  %1066 = vmatprep.mubr.f32.mxu1 %v852_v6 }
 0x3df   :  { %1385 = vmatprep.subr.mxu0 %v1468_v9  ;;  %1343 = vmatpush3.msra.mxu1 %v786_v7 }
 0x3e0   :  { %1386 = vmatpush3.msra.mxu0 %v807_v8  ;;  %1387 = vmatprep.mubr.msk.f32.mxu0 %vm1505_vm15, %v1468_v9 }
 0x3e1   :  { %1344 = vmatprep.subr.mxu1 %v801_v10  ;;  %1388 = vmatmul.mubr.msk.f32.vlgmr.msra.gmra.mxu0 %vm859_vm14, %v851_v11 }
 0x3e2   :  { %1345 = vmatpush3.msra.mxu1 %v785_v12  ;;  %1390 = vmatprep.subr.mxu0 %v1468_v9 }
 0x3e3   :  { %1346 = vmatprep.subr.mxu1 %v800_v13  ;;  %1398 = vmatprep.mubr.msk.f32.mxu0 %vm1505_vm15, %v1468_v9 }
 0x3e4   :  { %1347 = vmatpush3.msra.mxu1 %v784_v52  ;;  %1391 = vmatpush3.msra.mxu0 %v1146_v32 }
 0x3e5   :  { %1348 = vmatprep.subr.mxu1 %v799_v14  ;;  %1392 = vmatprep.subr.mxu0 %v1468_v9 }
 0x3e6   :  { %1349 = vmatpush3.msra.mxu1 %v783_v15  ;;  %1393 = vmatpush3.msra.mxu0 %v1145_v33 }
 0x3e7   :  { %1350 = vmatprep.subr.mxu1 %v798_v16  ;;  %1394 = vmatprep.subr.mxu0 %v1468_v9 }
 0x3e8   :  { %1351 = vmatpush3.msra.mxu1 %v782_v17  ;;  %1395 = vmatpush3.msra.mxu0 %v1144_v34 }
 0x3e9   :  { %1352 = vmatprep.subr.mxu1 %v797_v18  ;;  %1396 = vmatprep.subr.mxu0 %v1468_v9 }
 0x3ea   :  { %1353 = vmatpush3.msra.mxu1 %v781_v19  ;;  %1397 = vmatpush3.msra.mxu0 %v1143_v35 }
 0x3eb   :  { %1354 = vmatprep.subr.mxu1 %v796_v21 }
 0x3ec   :  { %1355 = vmatpush3.msra.mxu1 %v780_v22 }
 0x3ed   :  { %1356 = vmatprep.subr.mxu1 %v795_v23 }
 0x3ee   :  { %1357 = vmatpush3.msra.mxu1 %v779_v24 }
 0x3ef   :  { %1358 = vmatprep.subr.mxu1 %v794_v25 }
 0x3f0   :  { %1359 = vmatpush3.msra.mxu1 %v778_v20 }
 0x3f1   :  { %1360 = vmatprep.subr.mxu1 %v793_v26 }
 0x3f2   :  { %1361 = vmatpush3.msra.mxu1 %v777_v27 }
 0x3f3   :  { %1362 = vmatprep.subr.mxu1 %v792_v28 }
 0x3f4   :  { %1363 = vmatpush3.msra.mxu1 %v776_v29 }
 0x3f5   :  { %1364 = vmatprep.subr.mxu1 %v791_v30 }
 0x3f6   :  { %1365 = vmatpush3.msra.mxu1 %v775_v31 }
 0x3f7   :  { %1067 = vmatmul.mubr.f32.vlgmr.msra.gmra.mxu1 %v1925_v1 }
 0x496   :  { %v1296_v40 = vpop.f32.mrf.mxu1 }
 0x498   :  { %v1331_v36 = vpop.f32.mrf.mxu0  ;;  %v1297_v41 = vpop.f32.mrf.mxu1 }
 0x499   :  { %v1298_v42 = vadd.f32 %v1297_v41, %v1296_v40 }
 0x49a   :  { %v1332_v37 = vpop.f32.mrf.mxu0 }
 0x49b   :  { %v929_v44 = vadd.f32 %v1298_v42, %v1260_v43  ;;  %v1333_v45 = vadd.f32 %v1332_v37, %v1331_v36 }
 0x49d   :  { %v999_v47 = vadd.f32 %v1333_v45, %v929_v44 }
 0x4a1   :  { %v1138_v38 = vpop.f32.mrf.mxu0 }
 0x4a3   :  { %v1389_v39 = vpop.f32.mrf.mxu0 }
 0x4b7   :  { %v1366_v46 = vpop.f32.mrf.mxu1 }
 0x4b9   :  { %v1367_v9 = vpop.f32.mrf.mxu1 }
 0x4ba   :  { %v1368_v48 = vadd.f32 %v1367_v9, %v1366_v46 }
 0x4bc   :  { %v1069_v49 = vadd.f32 %v1368_v48, %v999_v47 }
 0x4be   :  { %v1139_v50 = vadd.f32 %v1138_v38, %v1069_v49 }
 0x4c0   :  { %v1142_v51 = vmax.f32 %v1139_v50, 0.0 }
 0x4c2   :  { %1399 = vmatmul.mubr.msk.f32.vlgmr.msra.gmra.mxu0 %vm859_vm14, %v1142_v51 }
 0x582   :  { %v1223_v54 = vpop.f32.mrf.mxu0 }
 0x583   :  { %v1224_v55 = vadd.f32 %v1262_v53, %v1223_v54 }
 0x584   :  { %v1400_v56 = vpop.f32.mrf.mxu0 }
 0x585   :  { %1228 = vst.msk [vmem:[#allocation5] sm:$0x3] %vm1227_vm0, %v1224_v55 }
 0x586   :  { %1457 = shalt.err (!%p1454_p4)
}
 0x587   :  { %1238 = dma.vmem_to_hbm [thread:$0]  %s1236_s18, 32, %s2053_s9, [#allocation6]  }
 0x588   :  { %1466 = dma.done.wait [#allocation6], 32  }
 0x589   :  { %1467 = vsyncadd [#allocation6], 4294967264 }
 0x58a   :  { %1242 = vsyncpa [#allocation6], 1 }

</bundles_post_ra>
